<compile_context>
chip_gen: v6e
topology: v6e:2x2x1
jax: 0.10.0
libtpu: 0.0.40
codegen_flags: <defaults>
</compile_context>

<pallas_src>
import numpy as np
import jax
import jax.numpy as jnp
from jax.experimental import pallas as pl
from jax.experimental.pallas import tpu as pltpu

# Shapes implied by the module's forward
N, C_IN, H, W = 2, 4, 16, 16
C_OUT = 8
K = 3                        # conv kernel size, padding = 1
HP, WP = H // 2, W // 2      # after AvgPool2d(2)
FEAT = C_OUT * HP * WP       # 512 = input_dim of the transfer head
OUT_DIM = 10                 # output_dim of the transfer head

HW = H * W                   # 256 flattened spatial positions (lanes)
NCI = N * C_IN               # 8   rows of the flattened input
NCO = N * C_OUT              # 16  rows of the conv activation (channel-major, batch-inner)
KK = K * K                   # 9 conv taps
IMROWS = KK * NCI            # 72  rows of the in-kernel im2col matrix
PAD = 128                    # halo on each side of a flattened row (>= W+1; 128 keeps the
XPW = PAD + HW + PAD         # interior store lane-tile aligned) -> padded width 512


# ---------------------------------------------------------------------------
# Kernel: the whole TransferNet forward for the full (tiny) batch, one grid step
# ---------------------------------------------------------------------------
def transfer_net_kernel(x_ref, wconv_ref, bconv_ref, mask_ref, weff_ref, bfc_ref,
                        o_ref, xpad_ref, im_ref):
    """
    x_ref    : (NCI, HW)         input, NCHW flattened to rows n*C_IN+ci, lanes h*W+w
    wconv_ref: (NCO, IMROWS)     conv weights as one im2col matrix, block-diag over batch
    bconv_ref: (NCO, 1)          conv bias replicated per sample (rows c*N + n)
    mask_ref : (K, HW)           per-kw column-validity masks (padding=1 along W)
    weff_ref : (C_OUT, HW, OUT_DIM)  AvgPool + NCHW flatten + Linear folded into one matrix
    bfc_ref  : (1, OUT_DIM)      linear bias
    o_ref    : (N, OUT_DIM)      final logits
    xpad_ref : (NCI, XPW)        VMEM scratch: zero-padded flattened rows (row halo)
    im_ref   : (IMROWS, HW)      VMEM scratch: im2col matrix (9 shifted+masked taps)
    """
    # ---- zero-padded flattened input (handles the h-direction halo of padding=1) ----
    xpad_ref[...] = jnp.zeros((NCI, XPW), jnp.float32)
    xpad_ref[:, PAD:PAD + HW] = x_ref[...]
    xpad = xpad_ref[...]
    masks = mask_ref[...]                                   # (K, HW)

    # ---- build the im2col matrix: 9 shifted taps, column-masked where the 3x3 window
    #      would wrap across a row edge (the row halo is already zero) ----
    for kh in range(K):
        for kw in range(K):
            t = kh * K + kw
            s = (kh - 1) * W + (kw - 1)                     # flat shift of tap (kh, kw)
            tap = xpad[:, PAD + s:PAD + s + HW]             # (NCI, HW), lane-dense
            if kw != 1:                                     # w-1 / w+1 column wrap
                tap = tap * masks[kw:kw + 1, :]
            im_ref[t * NCI:(t + 1) * NCI, :] = tap

    # ---- Conv2d(3x3, pad=1) for the whole batch: ONE MXU push, lane-dense output ----
    acc = jnp.dot(wconv_ref[...], im_ref[...],
                  preferred_element_type=jnp.float32)       # (NCO, HW) = (16, 256)
    acc = jnp.maximum(acc + bconv_ref[...], 0.0)            # bias + ReLU on full vregs

    # ---- AvgPool2d(2) + x.view(N,-1) + Linear(512,10), pre-folded into weff ----
    out = jnp.zeros((N, OUT_DIM), jnp.float32)
    for c in range(C_OUT):                                  # rows c*N:(c+1)*N = sample rows
        out = out + jnp.dot(acc[c * N:(c + 1) * N, :], weff_ref[c],
                            preferred_element_type=jnp.float32)
    o_ref[...] = out + bfc_ref[...]


# ---------------------------------------------------------------------------
# Wrappers
# ---------------------------------------------------------------------------
def transfer_net_fused(x_flat, p):
    return pl.pallas_call(
        transfer_net_kernel,
        out_shape=jax.ShapeDtypeStruct((N, OUT_DIM), jnp.float32),
        in_specs=[pl.BlockSpec(memory_space=pltpu.MemorySpace.VMEM)] * 6,
        out_specs=pl.BlockSpec(memory_space=pltpu.MemorySpace.VMEM),
        scratch_shapes=[pltpu.VMEM((NCI, XPW), jnp.float32),
                        pltpu.VMEM((IMROWS, HW), jnp.float32)],
    )(x_flat, p["wconv"], p["bconv"], p["mask"], p["weff"], p["bfc"])


@jax.jit
def transfer_net_forward(x_nchw, params):
    # Contiguous reshape of the NCHW input (no transpose/pad kernels in the XLA graph);
    # conv padding and layout handling live inside the single Pallas kernel.
    x_flat = x_nchw.reshape(N * C_IN, HW)
    return transfer_net_fused(x_flat, params)


def init_params(key):
    k1, k2, k3, k4 = jax.random.split(key, 4)
    # "PyTorch"-layout parameters of the backbone conv and the new transfer head.
    conv_w = jax.random.normal(k1, (C_OUT, C_IN, K, K), jnp.float32) * 0.1   # OIHW
    conv_b = jax.random.normal(k2, (C_OUT,), jnp.float32) * 0.1
    fc_w = jax.random.normal(k3, (OUT_DIM, FEAT), jnp.float32) * 0.05        # torch (out,in)
    fc_b = jax.random.normal(k4, (OUT_DIM,), jnp.float32) * 0.05

    cw, cb = np.asarray(conv_w), np.asarray(conv_b)
    fw, fb = np.asarray(fc_w), np.asarray(fc_b)

    # (1) Conv weights -> one (NCO, IMROWS) im2col matrix, block-diagonal over the batch,
    #     output rows ordered channel-major / batch-inner (row = c*N + n).
    wconv = np.zeros((NCO, IMROWS), np.float32)
    for c in range(C_OUT):
        for n in range(N):
            r = c * N + n
            for kh in range(K):
                for kw in range(K):
                    t = kh * K + kw
                    base = t * NCI + n * C_IN
                    wconv[r, base:base + C_IN] = cw[c, :, kh, kw]
    bconv = np.zeros((NCO, 1), np.float32)
    for c in range(C_OUT):
        bconv[c * N:(c + 1) * N, 0] = cb[c]

    # (2) Column-validity masks for padding=1 along W on the flattened spatial axis.
    mask = np.ones((K, HW), np.float32)
    wcol = np.arange(HW) % W
    mask[0, wcol == 0] = 0.0           # kw=0 reads column w-1
    mask[2, wcol == W - 1] = 0.0       # kw=2 reads column w+1

    # (3) AvgPool2d(2) + NCHW x.view(N,-1) + Linear folded into one matrix over the
    #     *unpooled* conv activation.
    weff = np.zeros((C_OUT, HW, OUT_DIM), np.float32)
    for c in range(C_OUT):
        for p in range(HW):
            h, w = p // W, p % W
            weff[c, p, :] = 0.25 * fw[:, c * HP * WP + (h // 2) * WP + (w // 2)]
    bfc = fb.reshape(1, OUT_DIM)

    return {
        # packed / fused operands consumed by the Pallas kernel
        "wconv": jnp.asarray(wconv), "bconv": jnp.asarray(bconv),
        "mask": jnp.asarray(mask), "weff": jnp.asarray(weff), "bfc": jnp.asarray(bfc),
        # raw parameters, kept only for the pure-JAX reference check
        "conv_w": conv_w, "conv_b": conv_b, "fc_w": fc_w, "fc_b": fc_b,
    }


def reference_forward(x, p):
    """Pure-JAX reference with the exact semantics of the PyTorch module."""
    y = jax.lax.conv_general_dilated(
        x, p["conv_w"], window_strides=(1, 1), padding=((1, 1), (1, 1)),
        dimension_numbers=("NCHW", "OIHW", "NCHW"))
    y = jnp.maximum(y + p["conv_b"].reshape(1, C_OUT, 1, 1), 0.0)
    y = y.reshape(N, C_OUT, HP, 2, WP, 2).mean(axis=(3, 5))   # AvgPool2d(2)
    y = y.reshape(N, FEAT)                                     # x.view(N, -1) (NCHW order)
    return y @ p["fc_w"].T + p["fc_b"]


if __name__ == "__main__":
    key = jax.random.PRNGKey(0)
    k_in, k_p = jax.random.split(key)
    x = jax.random.normal(k_in, (N, C_IN, H, W), jnp.float32)   # NCHW, like PyTorch
    params = init_params(k_p)

    out = transfer_net_forward(x, params)
    jax.block_until_ready(out)
    assert out.shape == (N, OUT_DIM)
    assert out.dtype == jnp.float32

    ref = reference_forward(x, params)
    err = float(jnp.max(jnp.abs(out - ref)))
    assert jnp.allclose(out, ref, atol=3e-2, rtol=3e-2), f"max abs err {err}"

    print("KERNEL_OK")
</pallas_src>

<mosaic_0001>
module attributes {stable_mosaic.version = 11 : i64} {
  func.func @transfer_net_kernel(%arg0: memref<8x256xf32, #tpu.memory_space<vmem>>, %arg1: memref<16x72xf32, #tpu.memory_space<vmem>>, %arg2: memref<16x1xf32, #tpu.memory_space<vmem>>, %arg3: memref<3x256xf32, #tpu.memory_space<vmem>>, %arg4: memref<8x256x10xf32, #tpu.memory_space<vmem>>, %arg5: memref<1x10xf32, #tpu.memory_space<vmem>>, %arg6: memref<2x10xf32, #tpu.memory_space<vmem>>, %arg7: memref<8x512xf32, #tpu.memory_space<vmem>>, %arg8: memref<72x256xf32, #tpu.memory_space<vmem>>) attributes {dimension_semantics = [], scalar_prefetch = 0 : i64, scratch_operands = 2 : i64, tpu.core_type = #tpu.core_type<tc>} {
    %cst = arith.constant 0.000000e+00 : f32
    %0 = vector.broadcast %cst : f32 to vector<8x512xf32>
    %c0 = arith.constant 0 : index
    %c0_0 = arith.constant 0 : index
    %1 = vector.load %arg7[%c0, %c0_0] : memref<8x512xf32, #tpu.memory_space<vmem>>, vector<8x512xf32>
    tpu.vector_store %arg7[%c0, %c0_0], %0 {strides = array<i32>} : memref<8x512xf32, #tpu.memory_space<vmem>>, vector<8x512xf32>,
    %c0_1 = arith.constant 0 : index
    %c0_2 = arith.constant 0 : index
    %2 = vector.load %arg0[%c0_1, %c0_2] : memref<8x256xf32, #tpu.memory_space<vmem>>, vector<8x256xf32>
    %c0_3 = arith.constant 0 : index
    %c128 = arith.constant 128 : index
    %3 = vector.load %arg7[%c0_3, %c128] : memref<8x512xf32, #tpu.memory_space<vmem>>, vector<8x256xf32>
    tpu.vector_store %arg7[%c0_3, %c128], %2 {strides = array<i32>} : memref<8x512xf32, #tpu.memory_space<vmem>>, vector<8x256xf32>,
    %c0_4 = arith.constant 0 : index
    %c0_5 = arith.constant 0 : index
    %4 = vector.load %arg7[%c0_4, %c0_5] : memref<8x512xf32, #tpu.memory_space<vmem>>, vector<8x512xf32>
    %c0_6 = arith.constant 0 : index
    %c0_7 = arith.constant 0 : index
    %5 = vector.load %arg3[%c0_6, %c0_7] : memref<3x256xf32, #tpu.memory_space<vmem>>, vector<3x256xf32>
    %6 = vector.extract_strided_slice %4 {offsets = [0, 111], sizes = [8, 256], strides = [1, 1]} : vector<8x512xf32> to vector<8x256xf32>
    %7 = vector.extract_strided_slice %5 {offsets = [0, 0], sizes = [1, 256], strides = [1, 1]} : vector<3x256xf32> to vector<1x256xf32>
    %8 = vector.broadcast %7 : vector<1x256xf32> to vector<8x256xf32>
    %9 = arith.mulf %6, %8 : vector<8x256xf32>
    %c0_8 = arith.constant 0 : index
    %c0_9 = arith.constant 0 : index
    %10 = vector.load %arg8[%c0_8, %c0_9] : memref<72x256xf32, #tpu.memory_space<vmem>>, vector<8x256xf32>
    tpu.vector_store %arg8[%c0_8, %c0_9], %9 {strides = array<i32>} : memref<72x256xf32, #tpu.memory_space<vmem>>, vector<8x256xf32>,
    %11 = vector.extract_strided_slice %4 {offsets = [0, 112], sizes = [8, 256], strides = [1, 1]} : vector<8x512xf32> to vector<8x256xf32>
    %c8 = arith.constant 8 : index
    %c0_10 = arith.constant 0 : index
    %12 = vector.load %arg8[%c8, %c0_10] : memref<72x256xf32, #tpu.memory_space<vmem>>, vector<8x256xf32>
    tpu.vector_store %arg8[%c8, %c0_10], %11 {strides = array<i32>} : memref<72x256xf32, #tpu.memory_space<vmem>>, vector<8x256xf32>,
    %13 = vector.extract_strided_slice %4 {offsets = [0, 113], sizes = [8, 256], strides = [1, 1]} : vector<8x512xf32> to vector<8x256xf32>
    %14 = vector.extract_strided_slice %5 {offsets = [2, 0], sizes = [1, 256], strides = [1, 1]} : vector<3x256xf32> to vector<1x256xf32>
    %15 = vector.broadcast %14 : vector<1x256xf32> to vector<8x256xf32>
    %16 = arith.mulf %13, %15 : vector<8x256xf32>
    %c16 = arith.constant 16 : index
    %c0_11 = arith.constant 0 : index
    %17 = vector.load %arg8[%c16, %c0_11] : memref<72x256xf32, #tpu.memory_space<vmem>>, vector<8x256xf32>
    tpu.vector_store %arg8[%c16, %c0_11], %16 {strides = array<i32>} : memref<72x256xf32, #tpu.memory_space<vmem>>, vector<8x256xf32>,
    %18 = vector.extract_strided_slice %4 {offsets = [0, 127], sizes = [8, 256], strides = [1, 1]} : vector<8x512xf32> to vector<8x256xf32>
    %19 = vector.extract_strided_slice %5 {offsets = [0, 0], sizes = [1, 256], strides = [1, 1]} : vector<3x256xf32> to vector<1x256xf32>
    %20 = vector.broadcast %19 : vector<1x256xf32> to vector<8x256xf32>
    %21 = arith.mulf %18, %20 : vector<8x256xf32>
    %c24 = arith.constant 24 : index
    %c0_12 = arith.constant 0 : index
    %22 = vector.load %arg8[%c24, %c0_12] : memref<72x256xf32, #tpu.memory_space<vmem>>, vector<8x256xf32>
    tpu.vector_store %arg8[%c24, %c0_12], %21 {strides = array<i32>} : memref<72x256xf32, #tpu.memory_space<vmem>>, vector<8x256xf32>,
    %23 = vector.extract_strided_slice %4 {offsets = [0, 128], sizes = [8, 256], strides = [1, 1]} : vector<8x512xf32> to vector<8x256xf32>
    %c32 = arith.constant 32 : index
    %c0_13 = arith.constant 0 : index
    %24 = vector.load %arg8[%c32, %c0_13] : memref<72x256xf32, #tpu.memory_space<vmem>>, vector<8x256xf32>
    tpu.vector_store %arg8[%c32, %c0_13], %23 {strides = array<i32>} : memref<72x256xf32, #tpu.memory_space<vmem>>, vector<8x256xf32>,
    %25 = vector.extract_strided_slice %4 {offsets = [0, 129], sizes = [8, 256], strides = [1, 1]} : vector<8x512xf32> to vector<8x256xf32>
    %26 = vector.extract_strided_slice %5 {offsets = [2, 0], sizes = [1, 256], strides = [1, 1]} : vector<3x256xf32> to vector<1x256xf32>
    %27 = vector.broadcast %26 : vector<1x256xf32> to vector<8x256xf32>
    %28 = arith.mulf %25, %27 : vector<8x256xf32>
    %c40 = arith.constant 40 : index
    %c0_14 = arith.constant 0 : index
    %29 = vector.load %arg8[%c40, %c0_14] : memref<72x256xf32, #tpu.memory_space<vmem>>, vector<8x256xf32>
    tpu.vector_store %arg8[%c40, %c0_14], %28 {strides = array<i32>} : memref<72x256xf32, #tpu.memory_space<vmem>>, vector<8x256xf32>,
    %30 = vector.extract_strided_slice %4 {offsets = [0, 143], sizes = [8, 256], strides = [1, 1]} : vector<8x512xf32> to vector<8x256xf32>
    %31 = vector.extract_strided_slice %5 {offsets = [0, 0], sizes = [1, 256], strides = [1, 1]} : vector<3x256xf32> to vector<1x256xf32>
    %32 = vector.broadcast %31 : vector<1x256xf32> to vector<8x256xf32>
    %33 = arith.mulf %30, %32 : vector<8x256xf32>
    %c48 = arith.constant 48 : index
    %c0_15 = arith.constant 0 : index
    %34 = vector.load %arg8[%c48, %c0_15] : memref<72x256xf32, #tpu.memory_space<vmem>>, vector<8x256xf32>
    tpu.vector_store %arg8[%c48, %c0_15], %33 {strides = array<i32>} : memref<72x256xf32, #tpu.memory_space<vmem>>, vector<8x256xf32>,
    %35 = vector.extract_strided_slice %4 {offsets = [0, 144], sizes = [8, 256], strides = [1, 1]} : vector<8x512xf32> to vector<8x256xf32>
    %c56 = arith.constant 56 : index
    %c0_16 = arith.constant 0 : index
    %36 = vector.load %arg8[%c56, %c0_16] : memref<72x256xf32, #tpu.memory_space<vmem>>, vector<8x256xf32>
    tpu.vector_store %arg8[%c56, %c0_16], %35 {strides = array<i32>} : memref<72x256xf32, #tpu.memory_space<vmem>>, vector<8x256xf32>,
    %37 = vector.extract_strided_slice %4 {offsets = [0, 145], sizes = [8, 256], strides = [1, 1]} : vector<8x512xf32> to vector<8x256xf32>
    %38 = vector.extract_strided_slice %5 {offsets = [2, 0], sizes = [1, 256], strides = [1, 1]} : vector<3x256xf32> to vector<1x256xf32>
    %39 = vector.broadcast %38 : vector<1x256xf32> to vector<8x256xf32>
    %40 = arith.mulf %37, %39 : vector<8x256xf32>
    %c64 = arith.constant 64 : index
    %c0_17 = arith.constant 0 : index
    %41 = vector.load %arg8[%c64, %c0_17] : memref<72x256xf32, #tpu.memory_space<vmem>>, vector<8x256xf32>
    tpu.vector_store %arg8[%c64, %c0_17], %40 {strides = array<i32>} : memref<72x256xf32, #tpu.memory_space<vmem>>, vector<8x256xf32>,
    %c0_18 = arith.constant 0 : index
    %c0_19 = arith.constant 0 : index
    %42 = vector.load %arg1[%c0_18, %c0_19] : memref<16x72xf32, #tpu.memory_space<vmem>>, vector<16x72xf32>
    %c0_20 = arith.constant 0 : index
    %c0_21 = arith.constant 0 : index
    %43 = vector.load %arg8[%c0_20, %c0_21] : memref<72x256xf32, #tpu.memory_space<vmem>>, vector<72x256xf32>
    %cst_22 = arith.constant dense<0.000000e+00> : vector<16x256xf32>
    %44 = tpu.matmul %42, %43, %cst_22 {dimension_numbers = #tpu.dot_dimension_numbers<[1], [0], [0], [1], [0, 0, 1, 1], [], []>} : vector<16x72xf32>, vector<72x256xf32>, vector<16x256xf32> -> vector<16x256xf32>
    %c0_23 = arith.constant 0 : index
    %c0_24 = arith.constant 0 : index
    %45 = vector.load %arg2[%c0_23, %c0_24] : memref<16x1xf32, #tpu.memory_space<vmem>>, vector<16x1xf32>
    %46 = vector.broadcast %45 : vector<16x1xf32> to vector<16x256xf32>
    %47 = arith.addf %44, %46 : vector<16x256xf32>
    %cst_25 = arith.constant 0.000000e+00 : f32
    %48 = vector.broadcast %cst_25 : f32 to vector<16x256xf32>
    %49 = arith.maximumf %47, %48 : vector<16x256xf32>
    %cst_26 = arith.constant 0.000000e+00 : f32
    %50 = vector.broadcast %cst_26 : f32 to vector<2x10xf32>
    %51 = vector.extract_strided_slice %49 {offsets = [0, 0], sizes = [2, 256], strides = [1, 1]} : vector<16x256xf32> to vector<2x256xf32>
    %c0_27 = arith.constant 0 : index
    %c0_28 = arith.constant 0 : index
    %c0_29 = arith.constant 0 : index
    %52 = vector.load %arg4[%c0_27, %c0_28, %c0_29] : memref<8x256x10xf32, #tpu.memory_space<vmem>>, vector<1x256x10xf32>
    %53 = vector.shape_cast %52 : vector<1x256x10xf32> to vector<256x10xf32>
    %cst_30 = arith.constant dense<0.000000e+00> : vector<2x10xf32>
    %54 = tpu.matmul %51, %53, %cst_30 {dimension_numbers = #tpu.dot_dimension_numbers<[1], [0], [0], [1], [0, 0, 1, 1], [], []>} : vector<2x256xf32>, vector<256x10xf32>, vector<2x10xf32> -> vector<2x10xf32>
    %55 = arith.addf %50, %54 : vector<2x10xf32>
    %56 = vector.extract_strided_slice %49 {offsets = [2, 0], sizes = [2, 256], strides = [1, 1]} : vector<16x256xf32> to vector<2x256xf32>
    %c1 = arith.constant 1 : index
    %c0_31 = arith.constant 0 : index
    %c0_32 = arith.constant 0 : index
    %57 = vector.load %arg4[%c1, %c0_31, %c0_32] : memref<8x256x10xf32, #tpu.memory_space<vmem>>, vector<1x256x10xf32>
    %58 = vector.shape_cast %57 : vector<1x256x10xf32> to vector<256x10xf32>
    %cst_33 = arith.constant dense<0.000000e+00> : vector<2x10xf32>
    %59 = tpu.matmul %56, %58, %cst_33 {dimension_numbers = #tpu.dot_dimension_numbers<[1], [0], [0], [1], [0, 0, 1, 1], [], []>} : vector<2x256xf32>, vector<256x10xf32>, vector<2x10xf32> -> vector<2x10xf32>
    %60 = arith.addf %55, %59 : vector<2x10xf32>
    %61 = vector.extract_strided_slice %49 {offsets = [4, 0], sizes = [2, 256], strides = [1, 1]} : vector<16x256xf32> to vector<2x256xf32>
    %c2 = arith.constant 2 : index
    %c0_34 = arith.constant 0 : index
    %c0_35 = arith.constant 0 : index
    %62 = vector.load %arg4[%c2, %c0_34, %c0_35] : memref<8x256x10xf32, #tpu.memory_space<vmem>>, vector<1x256x10xf32>
    %63 = vector.shape_cast %62 : vector<1x256x10xf32> to vector<256x10xf32>
    %cst_36 = arith.constant dense<0.000000e+00> : vector<2x10xf32>
    %64 = tpu.matmul %61, %63, %cst_36 {dimension_numbers = #tpu.dot_dimension_numbers<[1], [0], [0], [1], [0, 0, 1, 1], [], []>} : vector<2x256xf32>, vector<256x10xf32>, vector<2x10xf32> -> vector<2x10xf32>
    %65 = arith.addf %60, %64 : vector<2x10xf32>
    %66 = vector.extract_strided_slice %49 {offsets = [6, 0], sizes = [2, 256], strides = [1, 1]} : vector<16x256xf32> to vector<2x256xf32>
    %c3 = arith.constant 3 : index
    %c0_37 = arith.constant 0 : index
    %c0_38 = arith.constant 0 : index
    %67 = vector.load %arg4[%c3, %c0_37, %c0_38] : memref<8x256x10xf32, #tpu.memory_space<vmem>>, vector<1x256x10xf32>
    %68 = vector.shape_cast %67 : vector<1x256x10xf32> to vector<256x10xf32>
    %cst_39 = arith.constant dense<0.000000e+00> : vector<2x10xf32>
    %69 = tpu.matmul %66, %68, %cst_39 {dimension_numbers = #tpu.dot_dimension_numbers<[1], [0], [0], [1], [0, 0, 1, 1], [], []>} : vector<2x256xf32>, vector<256x10xf32>, vector<2x10xf32> -> vector<2x10xf32>
    %70 = arith.addf %65, %69 : vector<2x10xf32>
    %71 = vector.extract_strided_slice %49 {offsets = [8, 0], sizes = [2, 256], strides = [1, 1]} : vector<16x256xf32> to vector<2x256xf32>
    %c4 = arith.constant 4 : index
    %c0_40 = arith.constant 0 : index
    %c0_41 = arith.constant 0 : index
    %72 = vector.load %arg4[%c4, %c0_40, %c0_41] : memref<8x256x10xf32, #tpu.memory_space<vmem>>, vector<1x256x10xf32>
    %73 = vector.shape_cast %72 : vector<1x256x10xf32> to vector<256x10xf32>
    %cst_42 = arith.constant dense<0.000000e+00> : vector<2x10xf32>
    %74 = tpu.matmul %71, %73, %cst_42 {dimension_numbers = #tpu.dot_dimension_numbers<[1], [0], [0], [1], [0, 0, 1, 1], [], []>} : vector<2x256xf32>, vector<256x10xf32>, vector<2x10xf32> -> vector<2x10xf32>
    %75 = arith.addf %70, %74 : vector<2x10xf32>
    %76 = vector.extract_strided_slice %49 {offsets = [10, 0], sizes = [2, 256], strides = [1, 1]} : vector<16x256xf32> to vector<2x256xf32>
    %c5 = arith.constant 5 : index
    %c0_43 = arith.constant 0 : index
    %c0_44 = arith.constant 0 : index
    %77 = vector.load %arg4[%c5, %c0_43, %c0_44] : memref<8x256x10xf32, #tpu.memory_space<vmem>>, vector<1x256x10xf32>
    %78 = vector.shape_cast %77 : vector<1x256x10xf32> to vector<256x10xf32>
    %cst_45 = arith.constant dense<0.000000e+00> : vector<2x10xf32>
    %79 = tpu.matmul %76, %78, %cst_45 {dimension_numbers = #tpu.dot_dimension_numbers<[1], [0], [0], [1], [0, 0, 1, 1], [], []>} : vector<2x256xf32>, vector<256x10xf32>, vector<2x10xf32> -> vector<2x10xf32>
    %80 = arith.addf %75, %79 : vector<2x10xf32>
    %81 = vector.extract_strided_slice %49 {offsets = [12, 0], sizes = [2, 256], strides = [1, 1]} : vector<16x256xf32> to vector<2x256xf32>
    %c6 = arith.constant 6 : index
    %c0_46 = arith.constant 0 : index
    %c0_47 = arith.constant 0 : index
    %82 = vector.load %arg4[%c6, %c0_46, %c0_47] : memref<8x256x10xf32, #tpu.memory_space<vmem>>, vector<1x256x10xf32>
    %83 = vector.shape_cast %82 : vector<1x256x10xf32> to vector<256x10xf32>
    %cst_48 = arith.constant dense<0.000000e+00> : vector<2x10xf32>
    %84 = tpu.matmul %81, %83, %cst_48 {dimension_numbers = #tpu.dot_dimension_numbers<[1], [0], [0], [1], [0, 0, 1, 1], [], []>} : vector<2x256xf32>, vector<256x10xf32>, vector<2x10xf32> -> vector<2x10xf32>
    %85 = arith.addf %80, %84 : vector<2x10xf32>
    %86 = vector.extract_strided_slice %49 {offsets = [14, 0], sizes = [2, 256], strides = [1, 1]} : vector<16x256xf32> to vector<2x256xf32>
    %c7 = arith.constant 7 : index
    %c0_49 = arith.constant 0 : index
    %c0_50 = arith.constant 0 : index
    %87 = vector.load %arg4[%c7, %c0_49, %c0_50] : memref<8x256x10xf32, #tpu.memory_space<vmem>>, vector<1x256x10xf32>
    %88 = vector.shape_cast %87 : vector<1x256x10xf32> to vector<256x10xf32>
    %cst_51 = arith.constant dense<0.000000e+00> : vector<2x10xf32>
    %89 = tpu.matmul %86, %88, %cst_51 {dimension_numbers = #tpu.dot_dimension_numbers<[1], [0], [0], [1], [0, 0, 1, 1], [], []>} : vector<2x256xf32>, vector<256x10xf32>, vector<2x10xf32> -> vector<2x10xf32>
    %90 = arith.addf %85, %89 : vector<2x10xf32>
    %c0_52 = arith.constant 0 : index
    %c0_53 = arith.constant 0 : index
    %91 = vector.load %arg5[%c0_52, %c0_53] : memref<1x10xf32, #tpu.memory_space<vmem>>, vector<1x10xf32>
    %92 = vector.broadcast %91 : vector<1x10xf32> to vector<2x10xf32>
    %93 = arith.addf %90, %92 : vector<2x10xf32>
    %c0_54 = arith.constant 0 : index
    %c0_55 = arith.constant 0 : index
    %94 = vector.load %arg6[%c0_54, %c0_55] : memref<2x10xf32, #tpu.memory_space<vmem>>, vector<2x10xf32>
    tpu.vector_store %arg6[%c0_54, %c0_55], %93 {strides = array<i32>} : memref<2x10xf32, #tpu.memory_space<vmem>>, vector<2x10xf32>,
    return
  }
}

</mosaic_0001>

<bundles_post_ra>
// kernel: transfer_net_forward.1
= control target key start
LH: loop header
LB: loop body
LE: loop exit
PB: predicated region body
PF: predicated region fallthrough
CT: control target
= control target key end

     0   :  { %v38_v0 = vlaneseq  ;;  %v1815_v1 = vmov 0.0   ;;  %s2747_s0 = inlined_call_operand.vmem [shape: f32[8,256], index: 0, kind: input, shape index: {}]   ;;  %s2748_s1 = inlined_call_operand.vmem [shape: f32[16,72], index: 1, kind: input, shape index: {}]   ;;  %s2749_s2 = inlined_call_operand.vmem [shape: f32[16,1], index: 2, kind: input, shape index: {}]   ;;  %s2750_s3 = inlined_call_operand.vmem [shape: f32[3,256], index: 3, kind: input, shape index: {}]   ;;  %s2751_s4 = inlined_call_operand.vmem [shape: f32[8,256,10], index: 4, kind: input, shape index: {}]   ;;  %s2752_s5 = inlined_call_operand.vmem [shape: f32[1,10], index: 5, kind: input, shape index: {}]   ;;  %s2753_s6 = inlined_call_operand.hbm [shape: f32[2,10], index: 6, kind: output, shape index: {}]  }
   0x1   :  { %375 = vmatprep.mubr.f32.mxu0 %v1815_v1 }
   0x2   :  { %v39_v2 = vshrl.u32 %v38_v0, 7 }
   0x3   :  { %11 = vsyncpa [#allocation5], 0  ;;  %v36_v3 = vld [vmem:[%s2750_s3] sm:$0x77]  ;;  %s1816_s23 = smov 17   ;;  %s1817_s24 = smov 15  }
   0x4   :  { %v104_v4 = vsub.s32 2, %v39_v2  ;;  %v40_v5 = vsub.s32 0, %v39_v2  ;;  %v108_v6 = vsub.s32 6, %v39_v2  ;;  %v44_v7 = vsub.s32 4, %v39_v2  ;;  %s1818_s3 = smov 1   ;;  %s1819_s25 = smov 127  }
   0x5   :  { %s1820_s26 = smov 113   ;;  %s1821_s27 = smov 111   ;;  %v1880_v16 = vld [vmem:[%s2747_s0 + $0x8] sm:$0xff]  ;;  %v1887_v17 = vld [vmem:[%s2747_s0] sm:$0xff]  ;;  %vm79_vm0 = vcmask 138240   ;;  %vm143_vm1 = vcmask 121856  }
   0x6   :  { %v105_v8 = vrot.slane %v36_v3, %v104_v4  ;;  %v41_v9 = vrot.slane %v36_v3, %v40_v5  ;;  %v109_v10 = vrot.slane %v36_v3, %v108_v6  ;;  %v45_v11 = vrot.slane %v36_v3, %v44_v7  ;;  %s1822_s30 = smov 112   ;;  %s1823_s9 = smov 16   ;;  %v1306_v53 = vld [vmem:[%s2751_s4 + $0x1f8] sm:$0xff]  ;;  %v1305_v55 = vld [vmem:[%s2751_s4 + $0x1f0] sm:$0xff]  ;;  %v1304_v59 = vld [vmem:[%s2751_s4 + $0x1e8] sm:$0xff] }
   0x7   :  { %vm171_vm2 = vcmask 7168   ;;  %vm154_vm3 = vcmask 1039360   ;;  %vm126_vm4 = vcmask 924672   ;;  %vm62_vm5 = vcmask 908288   ;;  %v1290_v54 = vld [vmem:[%s2751_s4 + $0x178] sm:$0xff]  ;;  %1500 = vmatprep.subr.mxu1 %v1306_v53  ;;  %v1289_v58 = vld [vmem:[%s2751_s4 + $0x170] sm:$0xff] }
   0x8   :  { %v115_v12 = vrot.slane %v105_v8, %v104_v4  ;;  %v51_v13 = vrot.slane %v41_v9, %v40_v5  ;;  %v119_v14 = vrot.slane %v109_v10, %v104_v4  ;;  %v55_v15 = vrot.slane %v45_v11, %v40_v5  ;;  %1501 = vmatpush3.msra.mxu1 %v1290_v54  ;;  %v1288_v60 = vld [vmem:[%s2751_s4 + $0x168] sm:$0xff]  ;;  %v292_v61 = vld [vmem:[%s2749_s2] sm:$0xff]  ;;  %v1302_v2 = vld [vmem:[%s2751_s4 + $0x1d8] sm:$0xff] }
   0x9   :  { %v1824_v52 = vmov 0   ;;  %1502 = vmatprep.subr.mxu1 %v1305_v55  ;;  %v293_v62 = vld [vmem:[%s2749_s2 + $0x8] sm:$0xff]  ;;  %v1303_v63 = vld [vmem:[%s2751_s4 + $0x1e0] sm:$0xff]  ;;  %v1286_v3 = vld [vmem:[%s2751_s4 + $0x158] sm:$0xff]  ;;  %vm239_vm6 = vcmask 916480   ;;  %vm95_vm7 = vcmask 130048  }
   0xa   :  { %246 = vrot.lane.b32.xlu0 %v115_v12, %s1816_s23  ;;  %206 = vrot.lane.b32.xlu1 %v51_v13, %s1817_s24  ;;  %v1287_v0 = vld [vmem:[%s2751_s4 + $0x160] sm:$0xff]  ;;  %v1301_v4 = vld [vmem:[%s2751_s4 + $0x1d0] sm:$0xff]  ;;  %vm304_vm8 = vcmask 588800   ;;  %vm1257_vm9 = vcmask 74752  }
   0xb   :  { %1791 = vset.pattern.permute.xlu0 %v1824_v52  ;;  %1792 = vset.pattern.permute.xlu1 %v1824_v52  ;;  %v1285_v5 = vld [vmem:[%s2751_s4 + $0x150] sm:$0xff]  ;;  %v1300_v6 = vld [vmem:[%s2751_s4 + $0x1c8] sm:$0xff]  ;;  %v1299_v8 = vld [vmem:[%s2751_s4 + $0x1c0] sm:$0xff] }
   0xc   :  { %1503 = vmatpush3.msra.mxu1 %v1289_v58  ;;  %v1284_v7 = vld [vmem:[%s2751_s4 + $0x148] sm:$0xff]  ;;  %v1283_v9 = vld [vmem:[%s2751_s4 + $0x140] sm:$0xff]  ;;  %v1298_v10 = vld [vmem:[%s2751_s4 + $0x1b8] sm:$0xff] }
   0xd   :  { %1504 = vmatprep.subr.mxu1 %v1304_v59  ;;  %v1282_v11 = vld [vmem:[%s2751_s4 + $0x138] sm:$0xff]  ;;  %v272_v58 = vld [vmem:[%s2748_s1] sm:$0xff] }
   0xe   :  { %248 = vrot.lane.b32.xlu0 %v119_v14, %s1816_s23  ;;  %208 = vrot.lane.b32.xlu1 %v55_v15, %s1817_s24  ;;  %v423_v59 = vld [vmem:[%s2751_s4 + $0xf8] sm:$0xff] }
   0xf   :  { %1505 = vmatpush3.msra.mxu1 %v1288_v60  ;;  %v407_v60 = vld [vmem:[%s2751_s4 + $0x78] sm:$0xff] }
  0x10   :  { %1506 = vmatprep.subr.mxu1 %v1303_v63  ;;  %v273_v63 = vld [vmem:[%s2748_s1 + $0x8] sm:$0xff] }
  0x11   :  { %1507 = vmatpush3.msra.mxu1 %v1287_v0  ;;  %v421_v0 = vld [vmem:[%s2751_s4 + $0xe8] sm:$0xff] }
  0x12   :  { %180 = vrot.lane.b32.xlu0 %v115_v12, %s1818_s3  ;;  %182 = vrot.lane.b32.xlu1 %v119_v14, %s1818_s3 }
  0x13   :  { %1508 = vmatprep.subr.mxu1 %v1302_v2  ;;  %v405_v2 = vld [vmem:[%s2751_s4 + $0x68] sm:$0xff] }
  0x14   :  { %1509 = vmatpush3.msra.mxu1 %v1286_v3  ;;  %v420_v3 = vld [vmem:[%s2751_s4 + $0xe0] sm:$0xff] }
  0x15   :  { %1510 = vmatprep.subr.mxu1 %v1301_v4  ;;  %v419_v4 = vld [vmem:[%s2751_s4 + $0xd8] sm:$0xff] }
  0x16   :  { %150 = vrot.lane.b32.xlu0 %v51_v13, %s1819_s25  ;;  %152 = vrot.lane.b32.xlu1 %v55_v15, %s1819_s25 }
  0x17   :  { %1511 = vmatpush3.msra.mxu1 %v1285_v5  ;;  %v403_v5 = vld [vmem:[%s2751_s4 + $0x58] sm:$0xff] }
  0x18   :  { %1512 = vmatprep.subr.mxu1 %v1300_v6  ;;  %v418_v6 = vld [vmem:[%s2751_s4 + $0xd0] sm:$0xff] }
  0x19   :  { %1513 = vmatpush3.msra.mxu1 %v1284_v7  ;;  %v402_v7 = vld [vmem:[%s2751_s4 + $0x50] sm:$0xff] }
  0x1a   :  { %122 = vrot.lane.b32.xlu0 %v115_v12, %s1820_s26  ;;  %124 = vrot.lane.b32.xlu1 %v119_v14, %s1820_s26  ;;  %v1297_v12 = vld [vmem:[%s2751_s4 + $0x1b0] sm:$0xff]  ;;  %v1296_v14 = vld [vmem:[%s2751_s4 + $0x1a8] sm:$0xff] }
  0x1b   :  { %1514 = vmatprep.subr.mxu1 %v1299_v8  ;;  %v417_v8 = vld [vmem:[%s2751_s4 + $0xc8] sm:$0xff] }
  0x1c   :  { %1515 = vmatpush3.msra.mxu1 %v1283_v9  ;;  %v401_v9 = vld [vmem:[%s2751_s4 + $0x48] sm:$0xff] }
  0x1d   :  { %1516 = vmatprep.subr.mxu1 %v1298_v10  ;;  %v416_v10 = vld [vmem:[%s2751_s4 + $0xc0] sm:$0xff] }
  0x1e   :  { %58 = vrot.lane.b32.xlu0 %v51_v13, %s1821_s27  ;;  %60 = vrot.lane.b32.xlu1 %v55_v15, %s1821_s27  ;;  %v1281_v13 = vld [vmem:[%s2751_s4 + $0x130] sm:$0xff]  ;;  %v1280_v15 = vld [vmem:[%s2751_s4 + $0x128] sm:$0xff] }
  0x1f   :  { %1517 = vmatpush3.msra.mxu1 %v1282_v11  ;;  %v400_v11 = vld [vmem:[%s2751_s4 + $0x40] sm:$0xff] }
  0x20   :  { %1518 = vmatprep.subr.mxu1 %v1297_v12  ;;  %v415_v12 = vld [vmem:[%s2751_s4 + $0xb8] sm:$0xff] }
  0x21   :  { %1519 = vmatpush3.msra.mxu1 %v1281_v13  ;;  %v399_v13 = vld [vmem:[%s2751_s4 + $0x38] sm:$0xff] }
  0x22   :  { %235 = vrot.lane.b32.xlu1 %v1880_v16, %s1822_s30  ;;  %237 = vrot.lane.b32.xlu0 %v1815_v1, %s1822_s30 }
  0x23   :  { %1520 = vmatprep.subr.mxu1 %v1296_v14  ;;  %v414_v14 = vld [vmem:[%s2751_s4 + $0xb0] sm:$0xff] }
  0x24   :  { %1521 = vmatpush3.msra.mxu1 %v1280_v15  ;;  %v398_v15 = vld [vmem:[%s2751_s4 + $0x30] sm:$0xff] }
  0x26   :  { %233 = vrot.lane.b32.xlu1 %v1887_v17, %s1822_s30  ;;  %91 = vrot.lane.b32.xlu0 %v1887_v17, %s1823_s9 }
  0x2a   :  { %93 = vrot.lane.b32.xlu1 %v1880_v16, %s1823_s9 }
  0x7c   :  { %v247_v18 = vpop.permute.xlu0 %246  ;;  %v207_v19 = vpop.permute.xlu1 %206 }
  0x7d   :  { %v254_v20 = vmul.f32 %v247_v18, %v1887_v17  ;;  %v214_v23 = vmul.f32 %v207_v19, %v1887_v17 }
  0x7f   :  { %260 = vrot.lane.b32.xlu0 %v254_v20, %s1821_s27 }
  0x80   :  { %v249_v21 = vpop.permute.xlu0 %248  ;;  %v209_v22 = vpop.permute.xlu1 %208 }
  0x81   :  { %v256_v24 = vmul.f32 0.0, %v249_v21  ;;  %v216_v27 = vmul.f32 0.0, %v209_v22  ;;  %v250_v36 = vsel %vm79_vm0, %v247_v18, %v249_v21  ;;  %v210_v40 = vsel %vm143_vm1, %v207_v19, %v209_v22  ;;  %v1295_v18 = vld [vmem:[%s2751_s4 + $0x1a0] sm:$0xff] }
  0x82   :  { %v255_v39 = vmul.f32 %v250_v36, %v1880_v16  ;;  %v215_v42 = vmul.f32 %v210_v40, %v1880_v16  ;;  %v1279_v19 = vld [vmem:[%s2751_s4 + $0x120] sm:$0xff]  ;;  %1522 = vmatprep.subr.mxu1 %v1295_v18  ;;  %v413_v18 = vld [vmem:[%s2751_s4 + $0xa8] sm:$0xff] }
  0x83   :  { %264 = vrot.lane.b32.xlu1 %v256_v24, %s1821_s27  ;;  %220 = vrot.lane.b32.xlu0 %v214_v23, %s1820_s26 }
  0x84   :  { %v181_v25 = vpop.permute.xlu0 %180  ;;  %v183_v26 = vpop.permute.xlu1 %182  ;;  %1523 = vmatpush3.msra.mxu1 %v1279_v19  ;;  %v397_v19 = vld [vmem:[%s2751_s4 + $0x28] sm:$0xff] }
  0x85   :  { %v190_v28 = vmul.f32 0.0, %v183_v26  ;;  %v188_v31 = vmul.f32 %v181_v25, %v1887_v17  ;;  %v184_v41 = vsel %vm171_vm2, %v181_v25, %v183_v26 }
  0x86   :  { %v189_v43 = vmul.f32 %v184_v41, %v1880_v16 }
  0x87   :  { %224 = vrot.lane.b32.xlu1 %v216_v27, %s1820_s26  ;;  %198 = vrot.lane.b32.xlu0 %v190_v28, %s1819_s25 }
  0x88   :  { %v151_v29 = vpop.permute.xlu0 %150  ;;  %v153_v30 = vpop.permute.xlu1 %152 }
  0x89   :  { %v159_v32 = vmul.f32 0.0, %v151_v29  ;;  %v161_v34 = vmul.f32 %v153_v30, %v1880_v16  ;;  %v155_v46 = vsel %vm154_vm3, %v151_v29, %v153_v30 }
  0x8a   :  { %v160_v49 = vmul.f32 %v155_v46, %v1887_v17 }
  0x8b   :  { %165 = vrot.lane.b32.xlu0 %v159_v32, %s1818_s3  ;;  %194 = vrot.lane.b32.xlu1 %v188_v31, %s1819_s25 }
  0x8c   :  { %v125_v33 = vpop.permute.xlu1 %124  ;;  %v123_v37 = vpop.permute.xlu0 %122 }
  0x8d   :  { %v133_v35 = vmul.f32 %v125_v33, %v1880_v16  ;;  %v131_v38 = vmul.f32 0.0, %v123_v37  ;;  %v127_v47 = vsel %vm126_vm4, %v123_v37, %v125_v33 }
  0x8e   :  { %v132_v50 = vmul.f32 %v127_v47, %v1887_v17 }
  0x8f   :  { %141 = vrot.lane.b32.xlu0 %v133_v35, %s1817_s24  ;;  %169 = vrot.lane.b32.xlu1 %v161_v34, %s1818_s3 }
  0x90   :  { %v59_v44 = vpop.permute.xlu0 %58  ;;  %v61_v45 = vpop.permute.xlu1 %60 }
  0x91   :  { %v63_v48 = vsel %vm62_vm5, %v59_v44, %v61_v45  ;;  %v67_v56 = vmul.f32 0.0, %v59_v44  ;;  %v69_v57 = vmul.f32 %v61_v45, %v1880_v16 }
  0x92   :  { %v68_v51 = vmul.f32 %v63_v48, %v1887_v17 }
  0x93   :  { %262 = vrot.lane.b32.xlu0 %v255_v39, %s1821_s27  ;;  %137 = vrot.lane.b32.xlu1 %v131_v38, %s1817_s24 }
  0x94   :  { %v236_v20 = vpop.permute.xlu1 %235  ;;  %v238_v21 = vpop.permute.xlu0 %237 }
  0x95   :  { %v241_v38 = vsel %vm239_vm6, %v236_v20, %v238_v21  ;;  %v396_v21 = vld [vmem:[%s2751_s4 + $0x20] sm:$0xff] }
  0x97   :  { %222 = vrot.lane.b32.xlu0 %v215_v42, %s1820_s26  ;;  %196 = vrot.lane.b32.xlu1 %v189_v43, %s1819_s25 }
  0x98   :  { %v234_v22 = vpop.permute.xlu1 %233  ;;  %v92_v23 = vpop.permute.xlu0 %91 }
  0x99   :  { %v240_v41 = vsel %vm239_vm6, %v234_v22, %v236_v20  ;;  %v412_v20 = vld [vmem:[%s2751_s4 + $0xa0] sm:$0xff]  ;;  %v411_v22 = vld [vmem:[%s2751_s4 + $0x98] sm:$0xff] }
  0x9b   :  { %167 = vrot.lane.b32.xlu0 %v160_v49, %s1818_s3  ;;  %139 = vrot.lane.b32.xlu1 %v132_v50, %s1817_s24 }
  0x9c   :  { %v94_v24 = vpop.permute.xlu1 %93 }
  0x9d   :  { %v97_v54 = vsel %vm95_vm7, %v92_v23, %v94_v24  ;;  %v1294_v24 = vld [vmem:[%s2751_s4 + $0x198] sm:$0xff] }
  0x9e   :  { %1524 = vmatprep.subr.mxu1 %v1294_v24  ;;  %v1360_v24 = vld [vmem:[%s2751_s4 + $0x3a8] sm:$0xff] }
  0x9f   :  { %89 = vrot.lane.b32.xlu0 %v1815_v1, %s1823_s9  ;;  %75 = vrot.lane.b32.xlu1 %v68_v51, %s1816_s23 }
  0xa3   :  { %77 = vrot.lane.b32.xlu0 %v69_v57, %s1816_s23  ;;  %73 = vrot.lane.b32.xlu1 %v67_v56, %s1816_s23  ;;  %s1825_s23 = smov [#allocation4]  }
  0xa4   :  { %s1265_s27 = sshll.u32 %s1825_s23, 4  ;;  %s1266_s27 = int_to_ptr.vmem [resolvable:$true] %s1265_s27 }
  0xa5   :  { %s1793_s28 = scalar_lea.vmem %s1266_s27, 32  ;;  %p1798_p1 = scmp.lt.s32.totalorder %s1266_s27, %s1266_s27 }
  0xa6   :  { %p1794_p0 = scmp.ne.s32.totalorder %s1266_s27, %s1793_s28  ;;  %p1799_p2 = scmp.lt.s32.totalorder %s1793_s28, %s1793_s28 }
  0xa7   :  { %296 = vperm.xlu0 %1791, %v292_v61   ;;  %301 = vperm.xlu1 %1792, %v293_v62   ;;  %v422_v61 = vld [vmem:[%s2751_s4 + $0xf0] sm:$0xff] }
  0xa8   :  { %v406_v62 = vld [vmem:[%s2751_s4 + $0x70] sm:$0xff]  ;;  %p1800_p3 = por %p1799_p2, %p1798_p1 }
  0xaa   :  { %p1801_p4 = pnand %p1800_p3, %p1794_p0 }
  0xf1   :  { %v261_v25 = vpop.permute.xlu0 %260 }
  0xf5   :  { %v265_v26 = vpop.permute.xlu1 %264  ;;  %v221_v27 = vpop.permute.xlu0 %220 }
  0xf9   :  { %v225_v28 = vpop.permute.xlu1 %224  ;;  %v199_v29 = vpop.permute.xlu0 %198 }
  0xfd   :  { %v166_v30 = vpop.permute.xlu0 %165  ;;  %v195_v31 = vpop.permute.xlu1 %194 }
 0x101   :  { %v142_v32 = vpop.permute.xlu0 %141  ;;  %v170_v33 = vpop.permute.xlu1 %169 }
 0x105   :  { %v263_v34 = vpop.permute.xlu0 %262  ;;  %v138_v35 = vpop.permute.xlu1 %137 }
 0x106   :  { %v267_v36 = vsel %vm62_vm5, %v263_v34, %v265_v26  ;;  %v266_v37 = vsel %vm62_vm5, %v261_v25, %v263_v34  ;;  %v410_v25 = vld [vmem:[%s2751_s4 + $0x90] sm:$0xff]  ;;  %v1278_v26 = vld [vmem:[%s2751_s4 + $0x118] sm:$0xff]  ;;  %v1276_v34 = vld [vmem:[%s2751_s4 + $0x108] sm:$0xff] }
 0x107   :  { %325 = vmatprep.subr.mxu0 %v267_v36  ;;  %1525 = vmatpush3.msra.mxu1 %v1278_v26  ;;  %v1291_v36 = vld [vmem:[%s2751_s4 + $0x180] sm:$0xff]  ;;  %v1344_v26 = vld [vmem:[%s2751_s4 + $0x328] sm:$0xff] }
 0x108   :  { %326 = vmatpush1.msra.mxu0 %v266_v37  ;;  %v1370_v37 = vld [vmem:[%s2751_s4 + $0x3f8] sm:$0xff] }
 0x109   :  { %327 = vmatprep.subr.mxu0 %v241_v38  ;;  %v223_v39 = vpop.permute.xlu0 %222  ;;  %v197_v40 = vpop.permute.xlu1 %196  ;;  %v1275_v38 = vld [vmem:[%s2751_s4 + $0x100] sm:$0xff] }
 0x10a   :  { %328 = vmatpush1.msra.mxu0 %v240_v41  ;;  %v227_v42 = vsel %vm126_vm4, %v223_v39, %v225_v28  ;;  %v226_v43 = vsel %vm126_vm4, %v221_v27, %v223_v39  ;;  %v201_v44 = vsel %vm154_vm3, %v197_v40, %v199_v29  ;;  %v200_v47 = vsel %vm154_vm3, %v195_v31, %v197_v40  ;;  %v394_v27 = vld [vmem:[%s2751_s4 + $0x10] sm:$0xff]  ;;  %v409_v29 = vld [vmem:[%s2751_s4 + $0x88] sm:$0xff]  ;;  %v1338_v39 = vld [vmem:[%s2751_s4 + $0x2f8] sm:$0xff] }
 0x10b   :  { %329 = vmatprep.subr.mxu0 %v227_v42  ;;  %v1293_v28 = vld [vmem:[%s2751_s4 + $0x190] sm:$0xff]  ;;  %v393_v31 = vld [vmem:[%s2751_s4 + $0x8] sm:$0xff] }
 0x10c   :  { %330 = vmatpush1.msra.mxu0 %v226_v43  ;;  %1526 = vmatprep.subr.mxu1 %v1293_v28  ;;  %v1359_v28 = vld [vmem:[%s2751_s4 + $0x3a0] sm:$0xff] }
 0x10d   :  { %331 = vmatprep.subr.mxu0 %v201_v44  ;;  %v168_v45 = vpop.permute.xlu0 %167  ;;  %v140_v46 = vpop.permute.xlu1 %139 }
 0x10e   :  { %332 = vmatpush1.msra.mxu0 %v200_v47  ;;  %v173_v48 = vsel %vm171_vm2, %v168_v45, %v170_v33  ;;  %v172_v51 = vsel %vm171_vm2, %v166_v30, %v168_v45  ;;  %v145_v52 = vsel %vm143_vm1, %v140_v46, %v142_v32  ;;  %v144_v53 = vsel %vm143_vm1, %v138_v35, %v140_v46  ;;  %v1277_v30 = vld [vmem:[%s2751_s4 + $0x110] sm:$0xff]  ;;  %v1292_v32 = vld [vmem:[%s2751_s4 + $0x188] sm:$0xff]  ;;  %v408_v33 = vld [vmem:[%s2751_s4 + $0x80] sm:$0xff] }
 0x10f   :  { %333 = vmatprep.subr.mxu0 %v1880_v16  ;;  %1527 = vmatpush3.msra.mxu1 %v1277_v30  ;;  %v392_v35 = vld [vmem:[%s2751_s4] sm:$0xff]  ;;  %v1354_v47 = vld [vmem:[%s2751_s4 + $0x378] sm:$0xff] }
 0x110   :  { %334 = vmatpush1.msra.mxu0 %v1887_v17  ;;  %1528 = vmatprep.subr.mxu1 %v1292_v32  ;;  %v1343_v30 = vld [vmem:[%s2751_s4 + $0x320] sm:$0xff]  ;;  %v1358_v32 = vld [vmem:[%s2751_s4 + $0x398] sm:$0xff] }
 0x111   :  { %335 = vmatprep.subr.mxu0 %v173_v48  ;;  %v90_v49 = vpop.permute.xlu0 %89  ;;  %v76_v50 = vpop.permute.xlu1 %75  ;;  %1529 = vmatpush3.msra.mxu1 %v1276_v34  ;;  %v1342_v34 = vld [vmem:[%s2751_s4 + $0x318] sm:$0xff] }
 0x112   :  { %336 = vmatpush1.msra.mxu0 %v172_v51  ;;  %v96_v17 = vsel %vm95_vm7, %v90_v49, %v92_v23  ;;  %v395_v23 = vld [vmem:[%s2751_s4 + $0x18] sm:$0xff]  ;;  %1530 = vmatprep.subr.mxu1 %v1291_v36  ;;  %v1369_v49 = vld [vmem:[%s2751_s4 + $0x3f0] sm:$0xff] }
 0x113   :  { %337 = vmatprep.subr.mxu0 %v145_v52  ;;  %1531 = vmatpush3.msra.mxu1 %v1275_v38  ;;  %v1353_v51 = vld [vmem:[%s2751_s4 + $0x370] sm:$0xff] }
 0x114   :  { %338 = vmatpush1.msra.mxu0 %v144_v53  ;;  %1570 = vmatprep.subr.mxu1 %v1338_v39  ;;  %v1322_v53 = vld [vmem:[%s2751_s4 + $0x278] sm:$0xff]  ;;  %v1357_v36 = vld [vmem:[%s2751_s4 + $0x390] sm:$0xff] }
 0x115   :  { %v78_v55 = vpop.permute.xlu0 %77  ;;  %339 = vmatprep.subr.mxu0 %v97_v54  ;;  %v74_v16 = vpop.permute.xlu1 %73  ;;  %v1337_v54 = vld [vmem:[%s2751_s4 + $0x2f0] sm:$0xff] }
 0x116   :  { %340 = vmatpush1.msra.mxu0 %v96_v17  ;;  %v81_v56 = vsel %vm79_vm0, %v76_v50, %v78_v55  ;;  %v80_v57 = vsel %vm79_vm0, %v74_v16, %v76_v50  ;;  %v1368_v16 = vld [vmem:[%s2751_s4 + $0x3e8] sm:$0xff]  ;;  %v1321_v17 = vld [vmem:[%s2751_s4 + $0x270] sm:$0xff] }
 0x117   :  { %341 = vmatprep.subr.mxu0 %v81_v56  ;;  %v1352_v56 = vld [vmem:[%s2751_s4 + $0x368] sm:$0xff]  ;;  %v1341_v38 = vld [vmem:[%s2751_s4 + $0x310] sm:$0xff] }
 0x118   :  { %342 = vmatpush1.msra.mxu0 %v80_v57  ;;  %v1336_v57 = vld [vmem:[%s2751_s4 + $0x2e8] sm:$0xff]  ;;  %v1325_v39 = vld [vmem:[%s2751_s4 + $0x290] sm:$0xff] }
 0x119   :  { %1273 = vmatmul.mubr.msk.f32.vlgmr.msra.gmra.mxu0 %vm304_vm8, %v272_v58  ;;  %1535 = vmatprep.subr.mxu0 %v423_v59  ;;  %v1367_v58 = vld [vmem:[%s2751_s4 + $0x3e0] sm:$0xff]  ;;  %v1320_v59 = vld [vmem:[%s2751_s4 + $0x268] sm:$0xff] }
 0x11a   :  { %381 = vmatprep.mubr.f32.mxu0 %v1815_v1  ;;  %1536 = vmatpush3.msra.mxu0 %v407_v60  ;;  %v404_v1 = vld [vmem:[%s2751_s4 + $0x60] sm:$0xff] }
 0x11b   :  { %1537 = vmatprep.subr.mxu0 %v422_v61  ;;  %v1351_v60 = vld [vmem:[%s2751_s4 + $0x360] sm:$0xff] }
 0x11c   :  { %1538 = vmatpush3.msra.mxu0 %v406_v62  ;;  %v1335_v61 = vld [vmem:[%s2751_s4 + $0x2e0] sm:$0xff]  ;;  %v1366_v62 = vld [vmem:[%s2751_s4 + $0x3d8] sm:$0xff] }
 0x11d   :  { %1274 = vmatmul.mubr.msk.f32.gmra.mxu0 %vm304_vm8, %v273_v63  ;;  %1539 = vmatprep.subr.mxu0 %v421_v0  ;;  %v1319_v63 = vld [vmem:[%s2751_s4 + $0x260] sm:$0xff]  ;;  %v1350_v0 = vld [vmem:[%s2751_s4 + $0x358] sm:$0xff] }
 0x11e   :  { %1540 = vmatpush3.msra.mxu0 %v405_v2  ;;  %v1334_v2 = vld [vmem:[%s2751_s4 + $0x2d8] sm:$0xff] }
 0x11f   :  { %1541 = vmatprep.subr.mxu0 %v420_v3  ;;  %v1365_v3 = vld [vmem:[%s2751_s4 + $0x3d0] sm:$0xff] }
 0x120   :  { %1542 = vmatpush3.msra.mxu0 %v404_v1  ;;  %v1318_v1 = vld [vmem:[%s2751_s4 + $0x258] sm:$0xff] }
 0x121   :  { %1543 = vmatprep.subr.mxu0 %v419_v4  ;;  %v1349_v4 = vld [vmem:[%s2751_s4 + $0x350] sm:$0xff] }
 0x122   :  { %1544 = vmatpush3.msra.mxu0 %v403_v5  ;;  %v297_v40 = vpop.permute.xlu0 %296  ;;  %v1333_v5 = vld [vmem:[%s2751_s4 + $0x2d0] sm:$0xff] }
 0x123   :  { %1545 = vmatprep.subr.mxu0 %v418_v6  ;;  %v1364_v6 = vld [vmem:[%s2751_s4 + $0x3c8] sm:$0xff] }
 0x124   :  { %1546 = vmatpush3.msra.mxu0 %v402_v7  ;;  %v1317_v7 = vld [vmem:[%s2751_s4 + $0x250] sm:$0xff] }
 0x125   :  { %1547 = vmatprep.subr.mxu0 %v417_v8  ;;  %v1348_v8 = vld [vmem:[%s2751_s4 + $0x348] sm:$0xff] }
 0x126   :  { %1548 = vmatpush3.msra.mxu0 %v401_v9  ;;  %v1332_v9 = vld [vmem:[%s2751_s4 + $0x2c8] sm:$0xff] }
 0x127   :  { %1549 = vmatprep.subr.mxu0 %v416_v10  ;;  %v1363_v10 = vld [vmem:[%s2751_s4 + $0x3c0] sm:$0xff] }
 0x128   :  { %1550 = vmatpush3.msra.mxu0 %v400_v11  ;;  %v1316_v11 = vld [vmem:[%s2751_s4 + $0x248] sm:$0xff] }
 0x129   :  { %1551 = vmatprep.subr.mxu0 %v415_v12  ;;  %v1347_v12 = vld [vmem:[%s2751_s4 + $0x340] sm:$0xff] }
 0x12a   :  { %1552 = vmatpush3.msra.mxu0 %v399_v13  ;;  %v1331_v13 = vld [vmem:[%s2751_s4 + $0x2c0] sm:$0xff] }
 0x12b   :  { %1553 = vmatprep.subr.mxu0 %v414_v14  ;;  %v1362_v14 = vld [vmem:[%s2751_s4 + $0x3b8] sm:$0xff] }
 0x12c   :  { %1554 = vmatpush3.msra.mxu0 %v398_v15  ;;  %v1315_v15 = vld [vmem:[%s2751_s4 + $0x240] sm:$0xff] }
 0x12d   :  { %1555 = vmatprep.subr.mxu0 %v413_v18  ;;  %v1346_v18 = vld [vmem:[%s2751_s4 + $0x338] sm:$0xff] }
 0x12e   :  { %1556 = vmatpush3.msra.mxu0 %v397_v19  ;;  %v1330_v19 = vld [vmem:[%s2751_s4 + $0x2b8] sm:$0xff] }
 0x12f   :  { %1557 = vmatprep.subr.mxu0 %v412_v20  ;;  %v1361_v20 = vld [vmem:[%s2751_s4 + $0x3b0] sm:$0xff] }
 0x130   :  { %1558 = vmatpush3.msra.mxu0 %v396_v21  ;;  %v1314_v21 = vld [vmem:[%s2751_s4 + $0x238] sm:$0xff] }
 0x131   :  { %1559 = vmatprep.subr.mxu0 %v411_v22  ;;  %v1345_v22 = vld [vmem:[%s2751_s4 + $0x330] sm:$0xff] }
 0x132   :  { %1560 = vmatpush3.msra.mxu0 %v395_v23  ;;  %v1329_v23 = vld [vmem:[%s2751_s4 + $0x2b0] sm:$0xff] }
 0x133   :  { %1561 = vmatprep.subr.mxu0 %v410_v25  ;;  %v1313_v25 = vld [vmem:[%s2751_s4 + $0x230] sm:$0xff] }
 0x134   :  { %1562 = vmatpush3.msra.mxu0 %v394_v27  ;;  %v1328_v27 = vld [vmem:[%s2751_s4 + $0x2a8] sm:$0xff] }
 0x135   :  { %1563 = vmatprep.subr.mxu0 %v409_v29  ;;  %v1312_v29 = vld [vmem:[%s2751_s4 + $0x228] sm:$0xff] }
 0x136   :  { %1564 = vmatpush3.msra.mxu0 %v393_v31  ;;  %v1327_v31 = vld [vmem:[%s2751_s4 + $0x2a0] sm:$0xff] }
 0x137   :  { %1565 = vmatprep.subr.mxu0 %v408_v33  ;;  %v1311_v33 = vld [vmem:[%s2751_s4 + $0x220] sm:$0xff] }
 0x138   :  { %1566 = vmatpush3.msra.mxu0 %v392_v35  ;;  %v1326_v35 = vld [vmem:[%s2751_s4 + $0x298] sm:$0xff] }
 0x139   :  { %1605 = vmatprep.subr.mxu0 %v1370_v37  ;;  %v1310_v37 = vld [vmem:[%s2751_s4 + $0x218] sm:$0xff] }
 0x1d9   :  { %v377_v41 = vpop.f32.mrf.mxu0 }
 0x1da   :  { %v378_v42 = vadd.f32 %v377_v41, %v297_v40  ;;  %v1309_v41 = vld [vmem:[%s2751_s4 + $0x210] sm:$0xff] }
 0x1db   :  { %v379_v43 = vpop.f32.mrf.mxu0 }
 0x1dc   :  { %v380_v44 = vadd.f32 %v379_v43, %v297_v40  ;;  %v2159_v45 = vmax.f32 %v378_v42, 0.0  ;;  %v1356_v40 = vld [vmem:[%s2751_s4 + $0x388] sm:$0xff] }
 0x1dd   :  { %v1340_v42 = vld [vmem:[%s2751_s4 + $0x308] sm:$0xff] }
 0x1de   :  { %v389_v46 = vmax.f32 %v380_v44, 0.0  ;;  %v459_v52 = vrot.slane %v2159_v45, 2  ;;  %v1324_v43 = vld [vmem:[%s2751_s4 + $0x288] sm:$0xff]  ;;  %v1355_v44 = vld [vmem:[%s2751_s4 + $0x380] sm:$0xff] }
 0x1e0   :  { %597 = vmatprep.mubr.f32.mxu0 %v389_v46  ;;  %v460_v48 = vrot.slane %v389_v46, 2  ;;  %v745_v50 = vrot.slane %v389_v46, 6  ;;  %v637_v55 = vrot.slane %v389_v46, 4  ;;  %v1308_v46 = vld [vmem:[%s2751_s4 + $0x208] sm:$0xff] }
 0x1e1   :  { %598 = vmatmul.mubr.f32.vlgmr.msra.gmra.mxu0 %v2159_v45 }
 0x1e2   :  { %1606 = vmatpush3.msra.mxu0 %v1354_v47  ;;  %527 = vmatprep.mubr.f32.mxu1 %v460_v48  ;;  %v1339_v47 = vld [vmem:[%s2751_s4 + $0x300] sm:$0xff] }
 0x1e3   :  { %1607 = vmatprep.subr.mxu0 %v1369_v49  ;;  %812 = vmatprep.mubr.f32.mxu0 %v745_v50  ;;  %v1323_v48 = vld [vmem:[%s2751_s4 + $0x280] sm:$0xff]  ;;  %v744_v49 = vrot.slane %v2159_v45, 6  ;;  %v1434_v50 = vld [vmem:[%s2751_s4 + $0x5f8] sm:$0xff] }
 0x1e4   :  { %528 = vmatmul.mubr.f32.vlgmr.msra.gmra.mxu1 %v459_v52  ;;  %1608 = vmatpush3.msra.mxu0 %v1353_v51  ;;  %v1307_v51 = vld [vmem:[%s2751_s4 + $0x200] sm:$0xff]  ;;  %v1418_v52 = vld [vmem:[%s2751_s4 + $0x578] sm:$0xff] }
 0x1e5   :  { %1571 = vmatpush3.msra.mxu1 %v1322_v53  ;;  %704 = vmatprep.mubr.f32.mxu1 %v637_v55  ;;  %v636_v53 = vrot.slane %v2159_v45, 4  ;;  %v1433_v55 = vld [vmem:[%s2751_s4 + $0x5f0] sm:$0xff] }
 0x1e6   :  { %1572 = vmatprep.subr.mxu1 %v1337_v54  ;;  %1609 = vmatprep.subr.mxu0 %v1368_v16  ;;  %v1402_v54 = vld [vmem:[%s2751_s4 + $0x4f8] sm:$0xff]  ;;  %v1401_v45 = vld [vmem:[%s2751_s4 + $0x4f0] sm:$0xff] }
 0x1e7   :  { %1573 = vmatpush3.msra.mxu1 %v1321_v17  ;;  %1610 = vmatpush3.msra.mxu0 %v1352_v56  ;;  %v1386_v16 = vld [vmem:[%s2751_s4 + $0x478] sm:$0xff]  ;;  %v1417_v17 = vld [vmem:[%s2751_s4 + $0x570] sm:$0xff]  ;;  %v1432_v56 = vld [vmem:[%s2751_s4 + $0x5e8] sm:$0xff] }
 0x1e8   :  { %1574 = vmatprep.subr.mxu1 %v1336_v57  ;;  %1611 = vmatprep.subr.mxu0 %v1367_v58  ;;  %v1385_v57 = vld [vmem:[%s2751_s4 + $0x470] sm:$0xff]  ;;  %v1416_v58 = vld [vmem:[%s2751_s4 + $0x568] sm:$0xff] }
 0x1e9   :  { %1575 = vmatpush3.msra.mxu1 %v1320_v59  ;;  %1612 = vmatpush3.msra.mxu0 %v1351_v60  ;;  %v1400_v59 = vld [vmem:[%s2751_s4 + $0x4e8] sm:$0xff]  ;;  %v1431_v60 = vld [vmem:[%s2751_s4 + $0x5e0] sm:$0xff] }
 0x1ea   :  { %1576 = vmatprep.subr.mxu1 %v1335_v61  ;;  %1613 = vmatprep.subr.mxu0 %v1366_v62  ;;  %v1384_v61 = vld [vmem:[%s2751_s4 + $0x468] sm:$0xff]  ;;  %v1415_v62 = vld [vmem:[%s2751_s4 + $0x560] sm:$0xff] }
 0x1eb   :  { %1577 = vmatpush3.msra.mxu1 %v1319_v63  ;;  %1614 = vmatpush3.msra.mxu0 %v1350_v0  ;;  %v1399_v63 = vld [vmem:[%s2751_s4 + $0x4e0] sm:$0xff]  ;;  %v1430_v0 = vld [vmem:[%s2751_s4 + $0x5d8] sm:$0xff] }
 0x1ec   :  { %1578 = vmatprep.subr.mxu1 %v1334_v2  ;;  %1615 = vmatprep.subr.mxu0 %v1365_v3  ;;  %v1383_v2 = vld [vmem:[%s2751_s4 + $0x460] sm:$0xff]  ;;  %v1414_v3 = vld [vmem:[%s2751_s4 + $0x558] sm:$0xff] }
 0x1ed   :  { %1579 = vmatpush3.msra.mxu1 %v1318_v1  ;;  %1616 = vmatpush3.msra.mxu0 %v1349_v4  ;;  %v1398_v1 = vld [vmem:[%s2751_s4 + $0x4d8] sm:$0xff]  ;;  %v1429_v4 = vld [vmem:[%s2751_s4 + $0x5d0] sm:$0xff] }
 0x1ee   :  { %1580 = vmatprep.subr.mxu1 %v1333_v5  ;;  %1617 = vmatprep.subr.mxu0 %v1364_v6  ;;  %v1382_v5 = vld [vmem:[%s2751_s4 + $0x458] sm:$0xff]  ;;  %v1413_v6 = vld [vmem:[%s2751_s4 + $0x550] sm:$0xff] }
 0x1ef   :  { %1581 = vmatpush3.msra.mxu1 %v1317_v7  ;;  %1618 = vmatpush3.msra.mxu0 %v1348_v8  ;;  %v1397_v7 = vld [vmem:[%s2751_s4 + $0x4d0] sm:$0xff]  ;;  %v1428_v8 = vld [vmem:[%s2751_s4 + $0x5c8] sm:$0xff] }
 0x1f0   :  { %1582 = vmatprep.subr.mxu1 %v1332_v9  ;;  %1619 = vmatprep.subr.mxu0 %v1363_v10  ;;  %v1381_v9 = vld [vmem:[%s2751_s4 + $0x450] sm:$0xff]  ;;  %v1412_v10 = vld [vmem:[%s2751_s4 + $0x548] sm:$0xff] }
 0x1f1   :  { %1583 = vmatpush3.msra.mxu1 %v1316_v11  ;;  %1620 = vmatpush3.msra.mxu0 %v1347_v12  ;;  %v1396_v11 = vld [vmem:[%s2751_s4 + $0x4c8] sm:$0xff]  ;;  %v1427_v12 = vld [vmem:[%s2751_s4 + $0x5c0] sm:$0xff] }
 0x1f2   :  { %1584 = vmatprep.subr.mxu1 %v1331_v13  ;;  %1621 = vmatprep.subr.mxu0 %v1362_v14  ;;  %v1380_v13 = vld [vmem:[%s2751_s4 + $0x448] sm:$0xff]  ;;  %v1411_v14 = vld [vmem:[%s2751_s4 + $0x540] sm:$0xff] }
 0x1f3   :  { %1585 = vmatpush3.msra.mxu1 %v1315_v15  ;;  %1622 = vmatpush3.msra.mxu0 %v1346_v18  ;;  %v1395_v15 = vld [vmem:[%s2751_s4 + $0x4c0] sm:$0xff]  ;;  %v1426_v18 = vld [vmem:[%s2751_s4 + $0x5b8] sm:$0xff] }
 0x1f4   :  { %1586 = vmatprep.subr.mxu1 %v1330_v19  ;;  %1623 = vmatprep.subr.mxu0 %v1361_v20  ;;  %v383_v19 = vpop.f32.mrf.mxu0  ;;  %v1379_v20 = vld [vmem:[%s2751_s4 + $0x440] sm:$0xff] }
 0x1f5   :  { %1587 = vmatpush3.msra.mxu1 %v1314_v21  ;;  %1624 = vmatpush3.msra.mxu0 %v1345_v22  ;;  %v1410_v21 = vld [vmem:[%s2751_s4 + $0x538] sm:$0xff] }
 0x1f6   :  { %1588 = vmatprep.subr.mxu1 %v1329_v23  ;;  %1625 = vmatprep.subr.mxu0 %v1360_v24  ;;  %v1394_v22 = vld [vmem:[%s2751_s4 + $0x4b8] sm:$0xff]  ;;  %v1425_v23 = vld [vmem:[%s2751_s4 + $0x5b0] sm:$0xff] }
 0x1f7   :  { %1589 = vmatpush3.msra.mxu1 %v1313_v25  ;;  %1626 = vmatpush3.msra.mxu0 %v1344_v26  ;;  %v1378_v24 = vld [vmem:[%s2751_s4 + $0x438] sm:$0xff]  ;;  %v1409_v25 = vld [vmem:[%s2751_s4 + $0x530] sm:$0xff] }
 0x1f8   :  { %1590 = vmatprep.subr.mxu1 %v1328_v27  ;;  %1627 = vmatprep.subr.mxu0 %v1359_v28  ;;  %v1393_v26 = vld [vmem:[%s2751_s4 + $0x4b0] sm:$0xff]  ;;  %v1424_v27 = vld [vmem:[%s2751_s4 + $0x5a8] sm:$0xff]  ;;  %v385_v28 = vpop.f32.mrf.mxu0 }
 0x1f9   :  { %1591 = vmatpush3.msra.mxu1 %v1312_v29  ;;  %1628 = vmatpush3.msra.mxu0 %v1343_v30  ;;  %v302_v29 = vpop.permute.xlu1 %301  ;;  %v1377_v30 = vld [vmem:[%s2751_s4 + $0x430] sm:$0xff] }
 0x1fa   :  { %1592 = vmatprep.subr.mxu1 %v1327_v31  ;;  %1629 = vmatprep.subr.mxu0 %v1358_v32  ;;  %v1408_v31 = vld [vmem:[%s2751_s4 + $0x528] sm:$0xff] }
 0x1fb   :  { %1593 = vmatpush3.msra.mxu1 %v1311_v33  ;;  %1630 = vmatpush3.msra.mxu0 %v1342_v34  ;;  %v1392_v32 = vld [vmem:[%s2751_s4 + $0x4a8] sm:$0xff]  ;;  %v1423_v33 = vld [vmem:[%s2751_s4 + $0x5a0] sm:$0xff] }
 0x1fc   :  { %1594 = vmatprep.subr.mxu1 %v1326_v35  ;;  %1631 = vmatprep.subr.mxu0 %v1357_v36  ;;  %v1376_v34 = vld [vmem:[%s2751_s4 + $0x428] sm:$0xff]  ;;  %v1407_v35 = vld [vmem:[%s2751_s4 + $0x520] sm:$0xff]  ;;  %v386_v36 = vadd.f32 %v385_v28, %v302_v29 }
 0x1fd   :  { %1595 = vmatpush3.msra.mxu1 %v1310_v37  ;;  %1632 = vmatpush3.msra.mxu0 %v1341_v38  ;;  %v1391_v37 = vld [vmem:[%s2751_s4 + $0x4a0] sm:$0xff]  ;;  %v1422_v38 = vld [vmem:[%s2751_s4 + $0x598] sm:$0xff] }
 0x1fe   :  { %1596 = vmatprep.subr.mxu1 %v1325_v39  ;;  %1633 = vmatprep.subr.mxu0 %v1356_v40  ;;  %v384_v39 = vadd.f32 %v383_v19, %v302_v29  ;;  %v1375_v40 = vld [vmem:[%s2751_s4 + $0x420] sm:$0xff]  ;;  %v1477_v19 = vld [vmem:[%s2751_s4 + $0x750] sm:$0xff]  ;;  %v1490_v29 = vld [vmem:[%s2751_s4 + $0x7b8] sm:$0xff] }
 0x1ff   :  { %1597 = vmatpush3.msra.mxu1 %v1309_v41  ;;  %1634 = vmatpush3.msra.mxu0 %v1340_v42  ;;  %v1406_v41 = vld [vmem:[%s2751_s4 + $0x518] sm:$0xff]  ;;  %v1459_v28 = vld [vmem:[%s2751_s4 + $0x6c0] sm:$0xff] }
 0x200   :  { %1598 = vmatprep.subr.mxu1 %v1324_v43  ;;  %1635 = vmatprep.subr.mxu0 %v1355_v44  ;;  %v1390_v42 = vld [vmem:[%s2751_s4 + $0x498] sm:$0xff]  ;;  %v1421_v43 = vld [vmem:[%s2751_s4 + $0x590] sm:$0xff]  ;;  %v391_v44 = vmax.f32 %v386_v36, 0.0 }
 0x201   :  { %1599 = vmatpush3.msra.mxu1 %v1308_v46  ;;  %1636 = vmatpush3.msra.mxu0 %v1339_v47  ;;  %v1374_v46 = vld [vmem:[%s2751_s4 + $0x418] sm:$0xff]  ;;  %v1405_v47 = vld [vmem:[%s2751_s4 + $0x510] sm:$0xff] }
 0x202   :  { %1600 = vmatprep.subr.mxu1 %v1323_v48  ;;  %813 = vmatmul.mubr.f32.vlgmr.msra.gmra.mxu0 %v744_v49  ;;  %v2513_v48 = vmax.f32 %v384_v39, 0.0  ;;  %v1389_v49 = vld [vmem:[%s2751_s4 + $0x490] sm:$0xff]  ;;  %v1472_v39 = vld [vmem:[%s2751_s4 + $0x728] sm:$0xff] }
 0x203   :  { %1675 = vmatprep.subr.mxu0 %v1434_v50  ;;  %1601 = vmatpush3.msra.mxu1 %v1307_v51  ;;  %v1420_v50 = vld [vmem:[%s2751_s4 + $0x588] sm:$0xff]  ;;  %v1373_v51 = vld [vmem:[%s2751_s4 + $0x410] sm:$0xff] }
 0x204   :  { %1676 = vmatpush3.msra.mxu0 %v1418_v52  ;;  %705 = vmatmul.mubr.f32.vlgmr.msra.gmra.mxu1 %v636_v53  ;;  %v1404_v52 = vld [vmem:[%s2751_s4 + $0x508] sm:$0xff]  ;;  %v1457_v36 = vld [vmem:[%s2751_s4 + $0x6b0] sm:$0xff] }
 0x205   :  { %1640 = vmatprep.subr.mxu1 %v1402_v54  ;;  %1677 = vmatprep.subr.mxu0 %v1433_v55  ;;  %v1388_v53 = vld [vmem:[%s2751_s4 + $0x488] sm:$0xff]  ;;  %v1419_v54 = vld [vmem:[%s2751_s4 + $0x580] sm:$0xff] }
 0x206   :  { %1641 = vmatpush3.msra.mxu1 %v1386_v16  ;;  %1678 = vmatpush3.msra.mxu0 %v1417_v17  ;;  %v1372_v55 = vld [vmem:[%s2751_s4 + $0x408] sm:$0xff]  ;;  %v1403_v16 = vld [vmem:[%s2751_s4 + $0x500] sm:$0xff]  ;;  %v959_v17 = vrot.slane %v391_v44, 2 }
 0x207   :  { %1642 = vmatprep.subr.mxu1 %v1401_v45  ;;  %1679 = vmatprep.subr.mxu0 %v1432_v56  ;;  %v1387_v45 = vld [vmem:[%s2751_s4 + $0x480] sm:$0xff]  ;;  %v958_v56 = vrot.slane %v2513_v48, 2 }
 0x208   :  { %1643 = vmatpush3.msra.mxu1 %v1385_v57  ;;  %1680 = vmatpush3.msra.mxu0 %v1416_v58  ;;  %v1498_v57 = vld [vmem:[%s2751_s4 + $0x7f8] sm:$0xff]  ;;  %v1371_v58 = vld [vmem:[%s2751_s4 + $0x400] sm:$0xff] }
 0x209   :  { %1644 = vmatprep.subr.mxu1 %v1400_v59  ;;  %1681 = vmatprep.subr.mxu0 %v1431_v60  ;;  %v1482_v59 = vld [vmem:[%s2751_s4 + $0x778] sm:$0xff] }
 0x20a   :  { %1645 = vmatpush3.msra.mxu1 %v1384_v61  ;;  %1682 = vmatpush3.msra.mxu0 %v1415_v62  ;;  %v1466_v60 = vld [vmem:[%s2751_s4 + $0x6f8] sm:$0xff]  ;;  %v1497_v61 = vld [vmem:[%s2751_s4 + $0x7f0] sm:$0xff]  ;;  %v1175_v62 = vrot.slane %v391_v44, 6 }
 0x20b   :  { %1646 = vmatprep.subr.mxu1 %v1399_v63  ;;  %1683 = vmatprep.subr.mxu0 %v1430_v0  ;;  %v1450_v63 = vld [vmem:[%s2751_s4 + $0x678] sm:$0xff]  ;;  %v1067_v0 = vrot.slane %v391_v44, 4 }
 0x20c   :  { %1647 = vmatpush3.msra.mxu1 %v1383_v2  ;;  %1684 = vmatpush3.msra.mxu0 %v1414_v3  ;;  %v1481_v2 = vld [vmem:[%s2751_s4 + $0x770] sm:$0xff] }
 0x20d   :  { %1648 = vmatprep.subr.mxu1 %v1398_v1  ;;  %1685 = vmatprep.subr.mxu0 %v1429_v4  ;;  %v1465_v3 = vld [vmem:[%s2751_s4 + $0x6f0] sm:$0xff]  ;;  %v1496_v1 = vld [vmem:[%s2751_s4 + $0x7e8] sm:$0xff] }
 0x20e   :  { %1649 = vmatpush3.msra.mxu1 %v1382_v5  ;;  %1686 = vmatpush3.msra.mxu0 %v1413_v6  ;;  %v1449_v4 = vld [vmem:[%s2751_s4 + $0x670] sm:$0xff]  ;;  %v1480_v5 = vld [vmem:[%s2751_s4 + $0x768] sm:$0xff] }
 0x20f   :  { %1650 = vmatprep.subr.mxu1 %v1397_v7  ;;  %1687 = vmatprep.subr.mxu0 %v1428_v8  ;;  %v1464_v6 = vld [vmem:[%s2751_s4 + $0x6e8] sm:$0xff]  ;;  %v1495_v7 = vld [vmem:[%s2751_s4 + $0x7e0] sm:$0xff] }
 0x210   :  { %1651 = vmatpush3.msra.mxu1 %v1381_v9  ;;  %1688 = vmatpush3.msra.mxu0 %v1412_v10  ;;  %v1448_v8 = vld [vmem:[%s2751_s4 + $0x668] sm:$0xff]  ;;  %v1479_v9 = vld [vmem:[%s2751_s4 + $0x760] sm:$0xff] }
 0x211   :  { %1652 = vmatprep.subr.mxu1 %v1396_v11  ;;  %1689 = vmatprep.subr.mxu0 %v1427_v12  ;;  %v1463_v10 = vld [vmem:[%s2751_s4 + $0x6e0] sm:$0xff]  ;;  %v1494_v11 = vld [vmem:[%s2751_s4 + $0x7d8] sm:$0xff] }
 0x212   :  { %1653 = vmatpush3.msra.mxu1 %v1380_v13  ;;  %1690 = vmatpush3.msra.mxu0 %v1411_v14  ;;  %v1447_v12 = vld [vmem:[%s2751_s4 + $0x660] sm:$0xff]  ;;  %v1478_v13 = vld [vmem:[%s2751_s4 + $0x758] sm:$0xff] }
 0x213   :  { %1654 = vmatprep.subr.mxu1 %v1395_v15  ;;  %1691 = vmatprep.subr.mxu0 %v1426_v18  ;;  %v1462_v14 = vld [vmem:[%s2751_s4 + $0x6d8] sm:$0xff]  ;;  %v1493_v15 = vld [vmem:[%s2751_s4 + $0x7d0] sm:$0xff] }
 0x214   :  { %1655 = vmatpush3.msra.mxu1 %v1379_v20  ;;  %1692 = vmatpush3.msra.mxu0 %v1410_v21  ;;  %v1446_v18 = vld [vmem:[%s2751_s4 + $0x658] sm:$0xff]  ;;  %v1461_v20 = vld [vmem:[%s2751_s4 + $0x6d0] sm:$0xff]  ;;  %v1492_v21 = vld [vmem:[%s2751_s4 + $0x7c8] sm:$0xff] }
 0x215   :  { %1656 = vmatprep.subr.mxu1 %v1394_v22  ;;  %1693 = vmatprep.subr.mxu0 %v1425_v23  ;;  %v1445_v22 = vld [vmem:[%s2751_s4 + $0x650] sm:$0xff]  ;;  %v1476_v23 = vld [vmem:[%s2751_s4 + $0x748] sm:$0xff] }
 0x216   :  { %1657 = vmatpush3.msra.mxu1 %v1378_v24  ;;  %1694 = vmatpush3.msra.mxu0 %v1409_v25  ;;  %v1460_v24 = vld [vmem:[%s2751_s4 + $0x6c8] sm:$0xff]  ;;  %v1491_v25 = vld [vmem:[%s2751_s4 + $0x7c0] sm:$0xff] }
 0x217   :  { %1658 = vmatprep.subr.mxu1 %v1393_v26  ;;  %1695 = vmatprep.subr.mxu0 %v1424_v27  ;;  %v1444_v26 = vld [vmem:[%s2751_s4 + $0x648] sm:$0xff]  ;;  %v1475_v27 = vld [vmem:[%s2751_s4 + $0x740] sm:$0xff] }
 0x218   :  { %1659 = vmatpush3.msra.mxu1 %v1377_v30  ;;  %1696 = vmatpush3.msra.mxu0 %v1408_v31  ;;  %v1443_v30 = vld [vmem:[%s2751_s4 + $0x640] sm:$0xff]  ;;  %v1474_v31 = vld [vmem:[%s2751_s4 + $0x738] sm:$0xff] }
 0x219   :  { %1660 = vmatprep.subr.mxu1 %v1392_v32  ;;  %1697 = vmatprep.subr.mxu0 %v1423_v33  ;;  %v1458_v32 = vld [vmem:[%s2751_s4 + $0x6b8] sm:$0xff]  ;;  %v1489_v33 = vld [vmem:[%s2751_s4 + $0x7b0] sm:$0xff] }
 0x21a   :  { %1661 = vmatpush3.msra.mxu1 %v1376_v34  ;;  %1698 = vmatpush3.msra.mxu0 %v1407_v35  ;;  %v1442_v34 = vld [vmem:[%s2751_s4 + $0x638] sm:$0xff]  ;;  %v1473_v35 = vld [vmem:[%s2751_s4 + $0x730] sm:$0xff] }
 0x21b   :  { %1662 = vmatprep.subr.mxu1 %v1391_v37  ;;  %1699 = vmatprep.subr.mxu0 %v1422_v38  ;;  %v1488_v37 = vld [vmem:[%s2751_s4 + $0x7a8] sm:$0xff]  ;;  %v1441_v38 = vld [vmem:[%s2751_s4 + $0x630] sm:$0xff] }
 0x21c   :  { %1663 = vmatpush3.msra.mxu1 %v1375_v40  ;;  %1700 = vmatpush3.msra.mxu0 %v1406_v41  ;;  %v1456_v40 = vld [vmem:[%s2751_s4 + $0x6a8] sm:$0xff]  ;;  %v1487_v41 = vld [vmem:[%s2751_s4 + $0x7a0] sm:$0xff] }
 0x21d   :  { %1664 = vmatprep.subr.mxu1 %v1390_v42  ;;  %1701 = vmatprep.subr.mxu0 %v1421_v43  ;;  %v1440_v42 = vld [vmem:[%s2751_s4 + $0x628] sm:$0xff]  ;;  %v1471_v43 = vld [vmem:[%s2751_s4 + $0x720] sm:$0xff] }
 0x21e   :  { %1665 = vmatpush3.msra.mxu1 %v1374_v46  ;;  %1702 = vmatpush3.msra.mxu0 %v1405_v47  ;;  %v1486_v46 = vld [vmem:[%s2751_s4 + $0x798] sm:$0xff]  ;;  %v1439_v47 = vld [vmem:[%s2751_s4 + $0x620] sm:$0xff] }
 0x21f   :  { %1666 = vmatprep.subr.mxu1 %v1389_v49  ;;  %1703 = vmatprep.subr.mxu0 %v1420_v50  ;;  %v1470_v49 = vld [vmem:[%s2751_s4 + $0x718] sm:$0xff] }
 0x220   :  { %1667 = vmatpush3.msra.mxu1 %v1373_v51  ;;  %1704 = vmatpush3.msra.mxu0 %v1404_v52  ;;  %v1454_v50 = vld [vmem:[%s2751_s4 + $0x698] sm:$0xff]  ;;  %v1485_v51 = vld [vmem:[%s2751_s4 + $0x790] sm:$0xff] }
 0x221   :  { %1668 = vmatprep.subr.mxu1 %v1388_v53  ;;  %1705 = vmatprep.subr.mxu0 %v1419_v54  ;;  %v1438_v52 = vld [vmem:[%s2751_s4 + $0x618] sm:$0xff]  ;;  %v1469_v53 = vld [vmem:[%s2751_s4 + $0x710] sm:$0xff] }
 0x222   :  { %1669 = vmatpush3.msra.mxu1 %v1372_v55  ;;  %1706 = vmatpush3.msra.mxu0 %v1403_v16  ;;  %v1453_v54 = vld [vmem:[%s2751_s4 + $0x690] sm:$0xff]  ;;  %v1484_v55 = vld [vmem:[%s2751_s4 + $0x788] sm:$0xff] }
 0x223   :  { %1026 = vmatprep.mubr.f32.mxu0 %v959_v17  ;;  %1670 = vmatprep.subr.mxu1 %v1387_v45  ;;  %v1437_v16 = vld [vmem:[%s2751_s4 + $0x610] sm:$0xff]  ;;  %v1468_v17 = vld [vmem:[%s2751_s4 + $0x708] sm:$0xff] }
 0x224   :  { %916 = vmatprep.mubr.f32.mxu1 %v391_v44  ;;  %1027 = vmatmul.mubr.f32.vlgmr.msra.gmra.mxu0 %v958_v56  ;;  %v1455_v44 = vld [vmem:[%s2751_s4 + $0x6a0] sm:$0xff]  ;;  %v1452_v45 = vld [vmem:[%s2751_s4 + $0x688] sm:$0xff] }
 0x225   :  { %1745 = vmatprep.subr.mxu0 %v1498_v57  ;;  %1671 = vmatpush3.msra.mxu1 %v1371_v58  ;;  %v1483_v56 = vld [vmem:[%s2751_s4 + $0x780] sm:$0xff]  ;;  %v1436_v57 = vld [vmem:[%s2751_s4 + $0x608] sm:$0xff] }
 0x226   :  { %1746 = vmatpush3.msra.mxu0 %v1482_v59  ;;  %917 = vmatmul.mubr.f32.vlgmr.msra.gmra.mxu1 %v2513_v48  ;;  %v1467_v58 = vld [vmem:[%s2751_s4 + $0x700] sm:$0xff] }
 0x227   :  { %1710 = vmatprep.subr.mxu1 %v1466_v60  ;;  %1747 = vmatprep.subr.mxu0 %v1497_v61  ;;  %v1451_v59 = vld [vmem:[%s2751_s4 + $0x680] sm:$0xff]  ;;  %v1174_v60 = vrot.slane %v2513_v48, 6 }
 0x228   :  { %1242 = vmatprep.mubr.f32.mxu0 %v1175_v62  ;;  %1711 = vmatpush3.msra.mxu1 %v1450_v63  ;;  %v1435_v61 = vld [vmem:[%s2751_s4 + $0x600] sm:$0xff]  ;;  %v1066_v62 = vrot.slane %v2513_v48, 4 }
 0x229   :  { %1134 = vmatprep.mubr.f32.mxu1 %v1067_v0  ;;  %1748 = vmatpush3.msra.mxu0 %v1481_v2 }
 0x22a   :  { %1712 = vmatprep.subr.mxu1 %v1465_v3  ;;  %1749 = vmatprep.subr.mxu0 %v1496_v1 }
 0x22b   :  { %1713 = vmatpush3.msra.mxu1 %v1449_v4  ;;  %1750 = vmatpush3.msra.mxu0 %v1480_v5 }
 0x22c   :  { %1714 = vmatprep.subr.mxu1 %v1464_v6  ;;  %1751 = vmatprep.subr.mxu0 %v1495_v7 }
 0x22d   :  { %1715 = vmatpush3.msra.mxu1 %v1448_v8  ;;  %1752 = vmatpush3.msra.mxu0 %v1479_v9 }
 0x22e   :  { %1716 = vmatprep.subr.mxu1 %v1463_v10  ;;  %1753 = vmatprep.subr.mxu0 %v1494_v11 }
 0x22f   :  { %1717 = vmatpush3.msra.mxu1 %v1447_v12  ;;  %1754 = vmatpush3.msra.mxu0 %v1478_v13 }
 0x230   :  { %1718 = vmatprep.subr.mxu1 %v1462_v14  ;;  %1755 = vmatprep.subr.mxu0 %v1493_v15 }
 0x231   :  { %1719 = vmatpush3.msra.mxu1 %v1446_v18  ;;  %1756 = vmatpush3.msra.mxu0 %v1477_v19 }
 0x232   :  { %1720 = vmatprep.subr.mxu1 %v1461_v20  ;;  %1757 = vmatprep.subr.mxu0 %v1492_v21 }
 0x233   :  { %1721 = vmatpush3.msra.mxu1 %v1445_v22  ;;  %1758 = vmatpush3.msra.mxu0 %v1476_v23 }
 0x234   :  { %1722 = vmatprep.subr.mxu1 %v1460_v24  ;;  %1759 = vmatprep.subr.mxu0 %v1491_v25 }
 0x235   :  { %1723 = vmatpush3.msra.mxu1 %v1444_v26  ;;  %1760 = vmatpush3.msra.mxu0 %v1475_v27 }
 0x236   :  { %1724 = vmatprep.subr.mxu1 %v1459_v28  ;;  %1761 = vmatprep.subr.mxu0 %v1490_v29 }
 0x237   :  { %1725 = vmatpush3.msra.mxu1 %v1443_v30  ;;  %1762 = vmatpush3.msra.mxu0 %v1474_v31  ;;  %v1499_v30 = vld [vmem:[%s2752_s5] ss:$0 sm:$0xff] }
 0x238   :  { %1726 = vmatprep.subr.mxu1 %v1458_v32  ;;  %1763 = vmatprep.subr.mxu0 %v1489_v33 }
 0x239   :  { %1727 = vmatpush3.msra.mxu1 %v1442_v34  ;;  %1764 = vmatpush3.msra.mxu0 %v1473_v35 }
 0x23a   :  { %1728 = vmatprep.subr.mxu1 %v1457_v36  ;;  %1765 = vmatprep.subr.mxu0 %v1488_v37 }
 0x23b   :  { %1729 = vmatpush3.msra.mxu1 %v1441_v38  ;;  %1766 = vmatpush3.msra.mxu0 %v1472_v39 }
 0x23c   :  { %1730 = vmatprep.subr.mxu1 %v1456_v40  ;;  %1767 = vmatprep.subr.mxu0 %v1487_v41 }
 0x23d   :  { %1731 = vmatpush3.msra.mxu1 %v1440_v42  ;;  %1768 = vmatpush3.msra.mxu0 %v1471_v43 }
 0x23e   :  { %1732 = vmatprep.subr.mxu1 %v1455_v44  ;;  %1769 = vmatprep.subr.mxu0 %v1486_v46 }
 0x23f   :  { %1733 = vmatpush3.msra.mxu1 %v1439_v47  ;;  %1770 = vmatpush3.msra.mxu0 %v1470_v49 }
 0x240   :  { %1734 = vmatprep.subr.mxu1 %v1454_v50  ;;  %1771 = vmatprep.subr.mxu0 %v1485_v51 }
 0x241   :  { %1735 = vmatpush3.msra.mxu1 %v1438_v52  ;;  %1772 = vmatpush3.msra.mxu0 %v1469_v53 }
 0x242   :  { %1736 = vmatprep.subr.mxu1 %v1453_v54  ;;  %1773 = vmatprep.subr.mxu0 %v1484_v55 }
 0x243   :  { %1737 = vmatpush3.msra.mxu1 %v1437_v16  ;;  %1774 = vmatpush3.msra.mxu0 %v1468_v17 }
 0x244   :  { %1738 = vmatprep.subr.mxu1 %v1452_v45  ;;  %1775 = vmatprep.subr.mxu0 %v1483_v56 }
 0x245   :  { %1739 = vmatpush3.msra.mxu1 %v1436_v57  ;;  %1776 = vmatpush3.msra.mxu0 %v1467_v58 }
 0x246   :  { %1740 = vmatprep.subr.mxu1 %v1451_v59  ;;  %1243 = vmatmul.mubr.f32.vlgmr.msra.gmra.mxu0 %v1174_v60 }
 0x247   :  { %1741 = vmatpush3.msra.mxu1 %v1435_v61 }
 0x248   :  { %1135 = vmatmul.mubr.f32.vlgmr.msra.gmra.mxu1 %v1066_v62 }
 0x2a1   :  { %v1567_v0 = vpop.f32.mrf.mxu0 }
 0x2a3   :  { %v1568_v1 = vpop.f32.mrf.mxu0 }
 0x2a4   :  { %v1532_v63 = vpop.f32.mrf.mxu1  ;;  %v1569_v8 = vadd.f32 %v1568_v1, %v1567_v0 }
 0x2a6   :  { %v1533_v2 = vpop.f32.mrf.mxu1 }
 0x2a7   :  { %v1534_v6 = vadd.f32 %v1533_v2, %v1532_v63 }
 0x2a9   :  { %v600_v11 = vadd.f32 %v1569_v8, %v1534_v6 }
 0x2c2   :  { %v1637_v4 = vpop.f32.mrf.mxu0 }
 0x2c4   :  { %v1602_v3 = vpop.f32.mrf.mxu1  ;;  %v1638_v10 = vpop.f32.mrf.mxu0 }
 0x2c5   :  { %v1639_v15 = vadd.f32 %v1638_v10, %v1637_v4 }
 0x2c6   :  { %v1603_v5 = vpop.f32.mrf.mxu1 }
 0x2c7   :  { %v1604_v9 = vadd.f32 %v1603_v5, %v1602_v3 }
 0x2c9   :  { %v710_v14 = vadd.f32 %v1604_v9, %v600_v11 }
 0x2cb   :  { %v818_v19 = vadd.f32 %v1639_v15, %v710_v14 }
 0x2e4   :  { %v1707_v12 = vpop.f32.mrf.mxu0 }
 0x2e6   :  { %v1672_v7 = vpop.f32.mrf.mxu1  ;;  %v1708_v18 = vpop.f32.mrf.mxu0 }
 0x2e7   :  { %v1709_v23 = vadd.f32 %v1708_v18, %v1707_v12 }
 0x2e8   :  { %v1673_v13 = vpop.f32.mrf.mxu1 }
 0x2e9   :  { %v1674_v48 = vadd.f32 %v1673_v13, %v1672_v7 }
 0x2eb   :  { %v922_v21 = vadd.f32 %v1674_v48, %v818_v19 }
 0x2ed   :  { %v1032_v26 = vadd.f32 %v1709_v23, %v922_v21 }
 0x306   :  { %v1777_v20 = vpop.f32.mrf.mxu0 }
 0x308   :  { %v1742_v22 = vpop.f32.mrf.mxu1  ;;  %v1778_v24 = vpop.f32.mrf.mxu0 }
 0x309   :  { %v1779_v28 = vadd.f32 %v1778_v24, %v1777_v20 }
 0x30a   :  { %v1743_v25 = vpop.f32.mrf.mxu1 }
 0x30b   :  { %v1744_v27 = vadd.f32 %v1743_v25, %v1742_v22 }
 0x30d   :  { %v1140_v29 = vadd.f32 %v1744_v27, %v1032_v26 }
 0x30f   :  { %v1248_v31 = vadd.f32 %v1779_v28, %v1140_v29 }
 0x311   :  { %v1256_v32 = vadd.f32 %v1499_v30, %v1248_v31 }
 0x313   :  { %1258 = vst.msk [vmem:[#allocation4] sm:$0x3] %vm1257_vm9, %v1256_v32 }
 0x314   :  { %1804 = shalt.err (!%p1801_p4)
}
 0x315   :  { %1268 = dma.vmem_to_hbm [thread:$0]  %s1266_s27, 32, %s2753_s6, [#allocation5]  }
 0x316   :  { %1813 = dma.done.wait [#allocation5], 32  }
 0x317   :  { %1814 = vsyncadd [#allocation5], 4294967264 }
 0x318   :  { %1272 = vsyncpa [#allocation5], 1 }

</bundles_post_ra>
